<compile_context>
chip_gen: v7x
topology: tpu7x:2x2x1
jax: 0.10.0
libtpu: 0.0.40
codegen_flags: <defaults>
</compile_context>

<pallas_src>
import jax
import jax.numpy as jnp
from jax.experimental import pallas as pl
from jax.experimental.pallas import tpu as pltpu


def _round_up(x, m):
    return ((x + m - 1) // m) * m


def _leaky_relu(h, slope=0.01):
    return jnp.where(h > 0, h, slope * h)


_HIGHEST = jax.lax.Precision.HIGHEST


def global_model_kernel(batch_ref, xt_ref, u_ref,
                        w1u_ref, w1x_ref, b1_ref,
                        w2_ref, b2_ref,
                        w3_ref, b3_ref,
                        out_ref,
                        pooled_acc):
    step = pl.program_id(0)
    n_steps = pl.num_programs(0)
    B = pooled_acc.shape[0]
    tN = xt_ref.shape[1]

    # --- init: zero the resident pooled accumulator -----------------------------------
    @pl.when(step == 0)
    def _init():
        pooled_acc[...] = jnp.zeros_like(pooled_acc)

    # --- scatter_add(x, batch) for this node tile: one-hot matmul on the MXU ----------
    batch_ids = batch_ref[...]                                     # (1, tN), pad = -1
    row_ids = jax.lax.broadcasted_iota(jnp.int32, (B, tN), 0)      # cheap per-step iota
    onehot = (row_ids == batch_ids).astype(jnp.float32)            # (B, tN) exact 0/1

    # pooled (B, F) += onehot (B, tN) . x_tile (F, tN) contracted on the lane axis of
    # both operands (q @ k.T pattern) -> consumes the lane-dense tile directly.
    pooled_acc[...] += jax.lax.dot_general(
        onehot, xt_ref[...],
        dimension_numbers=(((1,), (1,)), ((), ())),
        preferred_element_type=jnp.float32,
        precision=_HIGHEST)

    # --- epilogue: MLP on [u, pooled] (concat folded into split first Linear) ---------
    @pl.when(step == n_steps - 1)
    def _mlp():
        f32 = jnp.float32
        pooled = pooled_acc[...]
        h = (jnp.dot(u_ref[...], w1u_ref[...].astype(f32),
                     preferred_element_type=f32, precision=_HIGHEST)
             + jnp.dot(pooled, w1x_ref[...].astype(f32),
                       preferred_element_type=f32, precision=_HIGHEST)
             + b1_ref[...])
        h = _leaky_relu(h)
        h = jnp.dot(h, w2_ref[...].astype(f32),
                    preferred_element_type=f32, precision=_HIGHEST) + b2_ref[...]
        h = _leaky_relu(h)
        h = jnp.dot(h, w3_ref[...].astype(f32),
                    preferred_element_type=f32, precision=_HIGHEST) + b3_ref[...]
        out_ref[...] = h.astype(out_ref.dtype)


def global_model_forward(x, batch, u, params, *, tile_n=None,
                         mlp_weight_dtype=jnp.float32,
                         target_bytes_per_step=1 << 20):
    """x: (N, F_node) f32; batch: (N,) i32 graph ids in [0, B); u: (B, F_glob) f32."""
    w1, b1, w2, b2, w3, b3 = params
    B, n_glob = u.shape
    N, f_node = x.shape
    H = w2.shape[0]
    T = w3.shape[1]

    # ---- lane-dense padding of hidden / target dims (exact: zero pad, LeakyReLU(0)=0) -
    H_pad = _round_up(H, 128)
    T_pad = _round_up(T, 128)
    wdt = mlp_weight_dtype
    w1p = jnp.pad(w1, ((0, 0), (0, H_pad - H))).astype(wdt)
    b1p = jnp.pad(b1, (0, H_pad - H)).reshape(1, -1).astype(jnp.float32)
    w2p = jnp.pad(w2, ((0, H_pad - H), (0, H_pad - H))).astype(wdt)
    b2p = jnp.pad(b2, (0, H_pad - H)).reshape(1, -1).astype(jnp.float32)
    w3p = jnp.pad(w3, ((0, H_pad - H), (0, T_pad - T))).astype(wdt)
    b3p = jnp.pad(b3, (0, T_pad - T)).reshape(1, -1).astype(jnp.float32)
    w1u = w1p[:n_glob, :]        # u part of the first Linear
    w1x = w1p[n_glob:, :]        # pooled(node) part of the first Linear

    # ---- node tile: size by HBM bytes per step (x row + batch id), not rows -----------
    bytes_per_node = (f_node + 1) * 4
    if tile_n is None:
        tile_n = max(target_bytes_per_step // bytes_per_node, 128)
    tN = _round_up(min(int(tile_n), 65536), 128)   # cap keeps VMEM modest on v7x (64 MiB)
    tN = min(tN, _round_up(N, 128))                # never tile past the (padded) data
    N_pad = _round_up(N, tN)
    grid = (N_pad // tN,)

    # ---- lane-dense x stream: (f_node, N_pad); padded cols are zero / batch id -1 -----
    x_t = jnp.pad(jnp.transpose(x.astype(jnp.float32)), ((0, 0), (0, N_pad - N)))
    batch_p = jnp.pad(batch.astype(jnp.int32), (0, N_pad - N),
                      constant_values=-1).reshape(1, -1)

    full = lambda arr: pl.BlockSpec(arr.shape, lambda i: (0,) * arr.ndim)
    in_specs = [
        pl.BlockSpec((1, tN), lambda i: (0, i)),          # batch ids  (tiled over N)
        pl.BlockSpec((f_node, tN), lambda i: (0, i)),     # x (transposed, tiled over N)
        full(u), full(w1u), full(w1x), full(b1p),
        full(w2p), full(b2p), full(w3p), full(b3p),
    ]
    out_spec = pl.BlockSpec((B, T_pad), lambda i: (0, 0))

    w_bytes = jnp.dtype(wdt).itemsize
    cost = pl.CostEstimate(
        flops=2 * B * N_pad * f_node
              + 2 * B * (n_glob * H_pad + f_node * H_pad + H_pad * H_pad + H_pad * T_pad),
        transcendentals=0,
        bytes_accessed=int((x_t.size + batch_p.size + u.size
                            + b1p.size + b2p.size + b3p.size + B * T_pad) * 4
                           + (w1p.size + w2p.size + w3p.size) * w_bytes),
    )

    out_padded = pl.pallas_call(
        global_model_kernel,
        out_shape=jax.ShapeDtypeStruct((B, T_pad), jnp.float32),
        grid=grid,
        in_specs=in_specs,
        out_specs=out_spec,
        scratch_shapes=[
            pltpu.VMEM((B, f_node), jnp.float32),   # pooled accumulator (resident)
        ],
        compiler_params=pltpu.CompilerParams(
            dimension_semantics=("arbitrary",),     # N is a reduction axis
            vmem_limit_bytes=64 * 1024 * 1024,      # room for the large streamed tiles
        ),
        cost_estimate=cost,
    )(batch_p, x_t, u, w1u, w1x, b1p, w2p, b2p, w3p, b3p)

    return out_padded[:, :T]


def init_params(key, n_node_features, n_global_features, n_hiddens, n_targets):
    """Deterministic synthetic parameters. Weights stored (in_dim, out_dim)."""
    k1, k2, k3, k4, k5, k6 = jax.random.split(key, 6)
    d_in = n_global_features + n_node_features
    w1 = jax.random.normal(k1, (d_in, n_hiddens), jnp.float32) * 0.1
    b1 = jax.random.normal(k2, (n_hiddens,), jnp.float32) * 0.1
    w2 = jax.random.normal(k3, (n_hiddens, n_hiddens), jnp.float32) * 0.1
    b2 = jax.random.normal(k4, (n_hiddens,), jnp.float32) * 0.1
    w3 = jax.random.normal(k5, (n_hiddens, n_targets), jnp.float32) * 0.1
    b3 = jax.random.normal(k6, (n_targets,), jnp.float32) * 0.1
    return (w1, b1, w2, b2, w3, b3)


def reference_forward(x, batch, u, params):
    """Plain-JAX f32 reference matching the PyTorch forward."""
    w1, b1, w2, b2, w3, b3 = params
    B = u.shape[0]
    pooled = jax.ops.segment_sum(x, batch, num_segments=B)
    h = jnp.concatenate([u, pooled], axis=1)
    h = h @ w1 + b1
    h = jnp.where(h > 0, h, 0.01 * h)
    h = h @ w2 + b2
    h = jnp.where(h > 0, h, 0.01 * h)
    return h @ w3 + b3


if __name__ == "__main__":
    # Small shapes consistent with the module.
    n_node_features = 4
    n_global_features = 4
    n_hiddens = 32
    n_targets = 3
    N_nodes = 8
    B_graphs = 2

    key = jax.random.PRNGKey(0)
    kx, ku, kp, kx2, ku2, kb2 = jax.random.split(key, 6)

    x = jax.random.normal(kx, (N_nodes, n_node_features), jnp.float32)
    u = jax.random.normal(ku, (B_graphs, n_global_features), jnp.float32)
    batch = jnp.array([0, 0, 0, 0, 1, 1, 1, 1], dtype=jnp.int32)
    # edge_index / edge_attr are unused by GlobalModel.forward (kept for API parity).

    params = init_params(kp, n_node_features, n_global_features, n_hiddens, n_targets)

    # --- main check: all-f32 path, pooling + MLP are (near-)exact -> tight tolerance ---
    out = jax.block_until_ready(global_model_forward(x, batch, u, params))
    ref = reference_forward(x, batch, u, params)
    assert out.shape == (B_graphs, n_targets)
    assert jnp.allclose(out, ref, atol=1e-3, rtol=1e-3), "mismatch vs reference (f32)"

    # --- multi-tile grid: exercises the resident accumulator across several steps ------
    N2, B2 = 300, 3
    x2 = jax.random.normal(kx2, (N2, n_node_features), jnp.float32)
    u2 = jax.random.normal(ku2, (B2, n_global_features), jnp.float32)
    batch2 = jnp.sort(jax.random.randint(kb2, (N2,), 0, B2)).astype(jnp.int32)
    out2 = jax.block_until_ready(
        global_model_forward(x2, batch2, u2, params, tile_n=128))
    ref2 = reference_forward(x2, batch2, u2, params)
    assert jnp.allclose(out2, ref2, atol=1e-3, rtol=1e-3), "mismatch (multi-tile)"

    # --- bf16 resident MLP weights (VMEM / HBM saving mode for large n_hiddens) --------
    out3 = jax.block_until_ready(
        global_model_forward(x, batch, u, params, mlp_weight_dtype=jnp.bfloat16))
    assert jnp.allclose(out3, ref, atol=3e-2, rtol=3e-2), "mismatch (bf16 weights)"

    print("KERNEL_OK")
</pallas_src>

<mosaic_0001>
module attributes {stable_mosaic.version = 11 : i64} {
  func.func @global_model_kernel(%arg0: i32, %arg1: memref<1x128xi32, #tpu.memory_space<vmem>>, %arg2: memref<4x128xf32, #tpu.memory_space<vmem>>, %arg3: memref<2x4xf32, #tpu.memory_space<vmem>>, %arg4: memref<4x128xf32, #tpu.memory_space<vmem>>, %arg5: memref<4x128xf32, #tpu.memory_space<vmem>>, %arg6: memref<1x128xf32, #tpu.memory_space<vmem>>, %arg7: memref<128x128xf32, #tpu.memory_space<vmem>>, %arg8: memref<1x128xf32, #tpu.memory_space<vmem>>, %arg9: memref<128x128xf32, #tpu.memory_space<vmem>>, %arg10: memref<1x128xf32, #tpu.memory_space<vmem>>, %arg11: memref<2x128xf32, #tpu.memory_space<vmem>>, %arg12: memref<2x4xf32, #tpu.memory_space<vmem>>) attributes {dimension_semantics = [#tpu.dimension_semantics<arbitrary>], iteration_bounds = array<i64: 1>, scalar_prefetch = 0 : i64, scratch_operands = 1 : i64, tpu.core_type = #tpu.core_type<tc>, window_params = [{transform_indices = @transform_0, window_bounds = array<i64: 1, 128>}, {transform_indices = @transform_1, window_bounds = array<i64: 4, 128>}, {pipeline_mode = #tpu.pipeline_mode<synchronous>, transform_indices = @transform_2, window_bounds = array<i64: 2, 4>}, {pipeline_mode = #tpu.pipeline_mode<synchronous>, transform_indices = @transform_3, window_bounds = array<i64: 4, 128>}, {pipeline_mode = #tpu.pipeline_mode<synchronous>, transform_indices = @transform_4, window_bounds = array<i64: 4, 128>}, {pipeline_mode = #tpu.pipeline_mode<synchronous>, transform_indices = @transform_5, window_bounds = array<i64: 1, 128>}, {pipeline_mode = #tpu.pipeline_mode<synchronous>, transform_indices = @transform_6, window_bounds = array<i64: 128, 128>}, {pipeline_mode = #tpu.pipeline_mode<synchronous>, transform_indices = @transform_7, window_bounds = array<i64: 1, 128>}, {pipeline_mode = #tpu.pipeline_mode<synchronous>, transform_indices = @transform_8, window_bounds = array<i64: 128, 128>}, {pipeline_mode = #tpu.pipeline_mode<synchronous>, transform_indices = @transform_9, window_bounds = array<i64: 1, 128>}, {pipeline_mode = #tpu.pipeline_mode<synchronous>, transform_indices = @transform_10, window_bounds = array<i64: 2, 128>}]} {
    %c0_i32 = arith.constant 0 : i32
    %0 = arith.cmpi eq, %arg0, %c0_i32 : i32
    %1 = arith.extui %0 : i1 to i32
    %c0_i32_0 = arith.constant 0 : i32
    %2 = arith.cmpi ne, %1, %c0_i32_0 : i32
    scf.if %2 {
      %cst_10 = arith.constant 0.000000e+00 : f32
      %17 = vector.broadcast %cst_10 : f32 to vector<2x4xf32>
      %c0_11 = arith.constant 0 : index
      %c0_12 = arith.constant 0 : index
      %18 = vector.load %arg12[%c0_11, %c0_12] : memref<2x4xf32, #tpu.memory_space<vmem>>, vector<2x4xf32>
      tpu.vector_store %arg12[%c0_11, %c0_12], %17 {strides = array<i32>} : memref<2x4xf32, #tpu.memory_space<vmem>>, vector<2x4xf32>,
    } else {
    }
    %c0 = arith.constant 0 : index
    %c0_1 = arith.constant 0 : index
    %3 = vector.load %arg1[%c0, %c0_1] : memref<1x128xi32, #tpu.memory_space<vmem>>, vector<1x128xi32>
    %4 = tpu.iota {dimensions = array<i32: 0>} : vector<2x128xi32>
    %5 = vector.broadcast %3 : vector<1x128xi32> to vector<2x128xi32>
    %6 = arith.cmpi eq, %4, %5 : vector<2x128xi32>
    %7 = arith.extui %6 : vector<2x128xi1> to vector<2x128xi32>
    %8 = arith.sitofp %7 : vector<2x128xi32> to vector<2x128xf32>
    %c0_2 = arith.constant 0 : index
    %c0_3 = arith.constant 0 : index
    %9 = vector.load %arg12[%c0_2, %c0_3] : memref<2x4xf32, #tpu.memory_space<vmem>>, vector<2x4xf32>
    %c0_4 = arith.constant 0 : index
    %c0_5 = arith.constant 0 : index
    %10 = vector.load %arg2[%c0_4, %c0_5] : memref<4x128xf32, #tpu.memory_space<vmem>>, vector<4x128xf32>
    %cst = arith.constant dense<0.000000e+00> : vector<2x4xf32>
    %11 = tpu.matmul %8, %10, %cst {dimension_numbers = #tpu.dot_dimension_numbers<[1], [1], [0], [0], [0, 0, 1, 0], [], []>, precision = #tpu.contract_precision<fp32>} : vector<2x128xf32>, vector<4x128xf32>, vector<2x4xf32> -> vector<2x4xf32>
    %12 = arith.addf %9, %11 : vector<2x4xf32>
    %c0_6 = arith.constant 0 : index
    %c0_7 = arith.constant 0 : index
    %13 = vector.load %arg12[%c0_6, %c0_7] : memref<2x4xf32, #tpu.memory_space<vmem>>, vector<2x4xf32>
    tpu.vector_store %arg12[%c0_6, %c0_7], %12 {strides = array<i32>} : memref<2x4xf32, #tpu.memory_space<vmem>>, vector<2x4xf32>,
    %c0_i32_8 = arith.constant 0 : i32
    %14 = arith.cmpi eq, %arg0, %c0_i32_8 : i32
    %15 = arith.extui %14 : i1 to i32
    %c0_i32_9 = arith.constant 0 : i32
    %16 = arith.cmpi ne, %15, %c0_i32_9 : i32
    scf.if %16 {
      %c0_10 = arith.constant 0 : index
      %c0_11 = arith.constant 0 : index
      %17 = vector.load %arg12[%c0_10, %c0_11] : memref<2x4xf32, #tpu.memory_space<vmem>>, vector<2x4xf32>
      %c0_12 = arith.constant 0 : index
      %c0_13 = arith.constant 0 : index
      %18 = vector.load %arg3[%c0_12, %c0_13] : memref<2x4xf32, #tpu.memory_space<vmem>>, vector<2x4xf32>
      %c0_14 = arith.constant 0 : index
      %c0_15 = arith.constant 0 : index
      %19 = vector.load %arg4[%c0_14, %c0_15] : memref<4x128xf32, #tpu.memory_space<vmem>>, vector<4x128xf32>
      %cst_16 = arith.constant dense<0.000000e+00> : vector<2x128xf32>
      %20 = tpu.matmul %18, %19, %cst_16 {dimension_numbers = #tpu.dot_dimension_numbers<[1], [0], [0], [1], [0, 0, 1, 1], [], []>, precision = #tpu.contract_precision<fp32>} : vector<2x4xf32>, vector<4x128xf32>, vector<2x128xf32> -> vector<2x128xf32>
      %c0_17 = arith.constant 0 : index
      %c0_18 = arith.constant 0 : index
      %21 = vector.load %arg5[%c0_17, %c0_18] : memref<4x128xf32, #tpu.memory_space<vmem>>, vector<4x128xf32>
      %cst_19 = arith.constant dense<0.000000e+00> : vector<2x128xf32>
      %22 = tpu.matmul %17, %21, %cst_19 {dimension_numbers = #tpu.dot_dimension_numbers<[1], [0], [0], [1], [0, 0, 1, 1], [], []>, precision = #tpu.contract_precision<fp32>} : vector<2x4xf32>, vector<4x128xf32>, vector<2x128xf32> -> vector<2x128xf32>
      %23 = arith.addf %20, %22 : vector<2x128xf32>
      %c0_20 = arith.constant 0 : index
      %c0_21 = arith.constant 0 : index
      %24 = vector.load %arg6[%c0_20, %c0_21] : memref<1x128xf32, #tpu.memory_space<vmem>>, vector<1x128xf32>
      %25 = vector.broadcast %24 : vector<1x128xf32> to vector<2x128xf32>
      %26 = arith.addf %23, %25 : vector<2x128xf32>
      %cst_22 = arith.constant 0.000000e+00 : f32
      %27 = vector.broadcast %cst_22 : f32 to vector<2x128xf32>
      %28 = arith.cmpf ogt, %26, %27 : vector<2x128xf32>
      %cst_23 = arith.constant 0.00999999977 : f32
      %29 = vector.broadcast %cst_23 : f32 to vector<2x128xf32>
      %30 = arith.mulf %29, %26 : vector<2x128xf32>
      %31 = arith.select %28, %26, %30 : vector<2x128xi1>, vector<2x128xf32>
      %c0_24 = arith.constant 0 : index
      %c0_25 = arith.constant 0 : index
      %32 = vector.load %arg7[%c0_24, %c0_25] : memref<128x128xf32, #tpu.memory_space<vmem>>, vector<128x128xf32>
      %cst_26 = arith.constant dense<0.000000e+00> : vector<2x128xf32>
      %33 = tpu.matmul %31, %32, %cst_26 {dimension_numbers = #tpu.dot_dimension_numbers<[1], [0], [0], [1], [0, 0, 1, 1], [], []>, precision = #tpu.contract_precision<fp32>} : vector<2x128xf32>, vector<128x128xf32>, vector<2x128xf32> -> vector<2x128xf32>
      %c0_27 = arith.constant 0 : index
      %c0_28 = arith.constant 0 : index
      %34 = vector.load %arg8[%c0_27, %c0_28] : memref<1x128xf32, #tpu.memory_space<vmem>>, vector<1x128xf32>
      %35 = vector.broadcast %34 : vector<1x128xf32> to vector<2x128xf32>
      %36 = arith.addf %33, %35 : vector<2x128xf32>
      %cst_29 = arith.constant 0.000000e+00 : f32
      %37 = vector.broadcast %cst_29 : f32 to vector<2x128xf32>
      %38 = arith.cmpf ogt, %36, %37 : vector<2x128xf32>
      %cst_30 = arith.constant 0.00999999977 : f32
      %39 = vector.broadcast %cst_30 : f32 to vector<2x128xf32>
      %40 = arith.mulf %39, %36 : vector<2x128xf32>
      %41 = arith.select %38, %36, %40 : vector<2x128xi1>, vector<2x128xf32>
      %c0_31 = arith.constant 0 : index
      %c0_32 = arith.constant 0 : index
      %42 = vector.load %arg9[%c0_31, %c0_32] : memref<128x128xf32, #tpu.memory_space<vmem>>, vector<128x128xf32>
      %cst_33 = arith.constant dense<0.000000e+00> : vector<2x128xf32>
      %43 = tpu.matmul %41, %42, %cst_33 {dimension_numbers = #tpu.dot_dimension_numbers<[1], [0], [0], [1], [0, 0, 1, 1], [], []>, precision = #tpu.contract_precision<fp32>} : vector<2x128xf32>, vector<128x128xf32>, vector<2x128xf32> -> vector<2x128xf32>
      %c0_34 = arith.constant 0 : index
      %c0_35 = arith.constant 0 : index
      %44 = vector.load %arg10[%c0_34, %c0_35] : memref<1x128xf32, #tpu.memory_space<vmem>>, vector<1x128xf32>
      %45 = vector.broadcast %44 : vector<1x128xf32> to vector<2x128xf32>
      %46 = arith.addf %43, %45 : vector<2x128xf32>
      %c0_36 = arith.constant 0 : index
      %c0_37 = arith.constant 0 : index
      %47 = vector.load %arg11[%c0_36, %c0_37] : memref<2x128xf32, #tpu.memory_space<vmem>>, vector<2x128xf32>
      tpu.vector_store %arg11[%c0_36, %c0_37], %46 {strides = array<i32>} : memref<2x128xf32, #tpu.memory_space<vmem>>, vector<2x128xf32>,
    } else {
    }
    return
  }
  func.func @transform_0(%arg0: i32) -> (i32, i32) {
    %c0_i32 = arith.constant 0 : i32
    %c0_i32_0 = arith.constant 0 : i32
    return %c0_i32, %arg0 : i32, i32
  }
  func.func @transform_1(%arg0: i32) -> (i32, i32) {
    %c0_i32 = arith.constant 0 : i32
    %c0_i32_0 = arith.constant 0 : i32
    return %c0_i32, %arg0 : i32, i32
  }
  func.func @transform_2(%arg0: i32) -> (i32, i32) {
    %c0_i32 = arith.constant 0 : i32
    %c0_i32_0 = arith.constant 0 : i32
    %c0_i32_1 = arith.constant 0 : i32
    return %c0_i32, %c0_i32_0 : i32, i32
  }
  func.func @transform_3(%arg0: i32) -> (i32, i32) {
    %c0_i32 = arith.constant 0 : i32
    %c0_i32_0 = arith.constant 0 : i32
    %c0_i32_1 = arith.constant 0 : i32
    return %c0_i32, %c0_i32_0 : i32, i32
  }
  func.func @transform_4(%arg0: i32) -> (i32, i32) {
    %c0_i32 = arith.constant 0 : i32
    %c0_i32_0 = arith.constant 0 : i32
    %c0_i32_1 = arith.constant 0 : i32
    return %c0_i32, %c0_i32_0 : i32, i32
  }
  func.func @transform_5(%arg0: i32) -> (i32, i32) {
    %c0_i32 = arith.constant 0 : i32
    %c0_i32_0 = arith.constant 0 : i32
    %c0_i32_1 = arith.constant 0 : i32
    return %c0_i32, %c0_i32_0 : i32, i32
  }
  func.func @transform_6(%arg0: i32) -> (i32, i32) {
    %c0_i32 = arith.constant 0 : i32
    %c0_i32_0 = arith.constant 0 : i32
    %c0_i32_1 = arith.constant 0 : i32
    return %c0_i32, %c0_i32_0 : i32, i32
  }
  func.func @transform_7(%arg0: i32) -> (i32, i32) {
    %c0_i32 = arith.constant 0 : i32
    %c0_i32_0 = arith.constant 0 : i32
    %c0_i32_1 = arith.constant 0 : i32
    return %c0_i32, %c0_i32_0 : i32, i32
  }
  func.func @transform_8(%arg0: i32) -> (i32, i32) {
    %c0_i32 = arith.constant 0 : i32
    %c0_i32_0 = arith.constant 0 : i32
    %c0_i32_1 = arith.constant 0 : i32
    return %c0_i32, %c0_i32_0 : i32, i32
  }
  func.func @transform_9(%arg0: i32) -> (i32, i32) {
    %c0_i32 = arith.constant 0 : i32
    %c0_i32_0 = arith.constant 0 : i32
    %c0_i32_1 = arith.constant 0 : i32
    return %c0_i32, %c0_i32_0 : i32, i32
  }
  func.func @transform_10(%arg0: i32) -> (i32, i32) {
    %c0_i32 = arith.constant 0 : i32
    %c0_i32_0 = arith.constant 0 : i32
    %c0_i32_1 = arith.constant 0 : i32
    return %c0_i32, %c0_i32_0 : i32, i32
  }
}

</mosaic_0001>

<bundles_post_ra>
// kernel: tpu_custom_call.1
= control target key start
LH: loop header
LB: loop body
LE: loop exit
PB: predicated region body
PF: predicated region fallthrough
CT: control target
= control target key end

     0   :  { %15 = vsyncpa [#allocation4], 0  ;;  %s5087_s0 = inlined_call_operand.hbm [shape: s32[1,128], index: 0, kind: input, shape index: {}]   ;;  %s5088_s1 = inlined_call_operand.hbm [shape: f32[4,128], index: 1, kind: input, shape index: {}]   ;;  %s5089_s2 = inlined_call_operand.hbm [shape: f32[2,4], index: 2, kind: input, shape index: {}]   ;;  %s5090_s3 = inlined_call_operand.hbm [shape: f32[4,128], index: 3, kind: input, shape index: {}]   ;;  %s5091_s4 = inlined_call_operand.hbm [shape: f32[4,128], index: 4, kind: input, shape index: {}]   ;;  %s5092_s5 = inlined_call_operand.hbm [shape: f32[1,128], index: 5, kind: input, shape index: {}]   ;;  %s5093_s6 = inlined_call_operand.hbm [shape: f32[128,128], index: 6, kind: input, shape index: {}]   ;;  %s5094_s7 = inlined_call_operand.hbm [shape: f32[1,128], index: 7, kind: input, shape index: {}]   ;;  %s5095_s8 = inlined_call_operand.hbm [shape: f32[128,128], index: 8, kind: input, shape index: {}]   ;;  %s5096_s9 = inlined_call_operand.hbm [shape: f32[1,128], index: 9, kind: input, shape index: {}]   ;;  %s5097_s10 = inlined_call_operand.hbm [shape: f32[2,128], index: 10, kind: output, shape index: {}]  }
   0x1   :  { %16 = vsyncpa [#allocation7], 0 }
   0x2   :  { %17 = vsyncpa [#allocation10], 0 }
   0x3   :  { %18 = vsyncpa [#allocation13], 0 }
   0x4   :  { %19 = vsyncpa [#allocation16], 0 }
   0x5   :  { %20 = vsyncpa [#allocation19], 0 }
   0x6   :  { %21 = vsyncpa [#allocation5], 0  ;;  %s4240_s13 = smov [#allocation6]   ;;  %s4241_s15 = smov [#allocation9]  }
   0x7   :  { %s38_s14 = sshll.u32 %s4240_s13, 4  ;;  %s58_s16 = sshll.u32 %s4241_s15, 4  ;;  %s39_s14 = int_to_ptr.vmem [resolvable:$true] %s38_s14  ;;  %s59_s16 = int_to_ptr.vmem [resolvable:$true] %s58_s16 }
   0x8   :  { %s3984_s19 = scalar_lea.hbm %s5088_s1, 64 }
   0x9   :  { %p3985_p0 = scmp.ne.s32.totalorder %s5088_s1, %s3984_s19  ;;  %p3988_p1 = scmp.lt.u32.totalorder %s3984_s19, %s5088_s1 }
   0xb   :  { %p3990_p2 = pnand %p3988_p1, %p3985_p0 }
   0xd   :  { %3993 = shalt.err (!%p3990_p2)
}
   0xe   :  { %s3994_s24 = scalar_lea.vmem %s39_s14, 64  ;;  %p3999_p4 = scmp.lt.s32.totalorder %s39_s14, %s39_s14 }
   0xf   :  { %p3995_p3 = scmp.ne.s32.totalorder %s39_s14, %s3994_s24  ;;  %p4000_p5 = scmp.lt.s32.totalorder %s3994_s24, %s3994_s24 }
  0x11   :  { %p4001_p6 = por %p4000_p5, %p3999_p4 }
  0x13   :  { %p4002_p7 = pnand %p4001_p6, %p3995_p3 }
  0x15   :  { %4005 = shalt.err (!%p4002_p7)
}
  0x16   :  { %41 = dma.hbm_to_vmem [thread:$0]  %s5088_s1, 64, %s39_s14, [#allocation7]  }
  0x17   :  { %s4006_s29 = scalar_lea.hbm %s5090_s3, 64 }
  0x18   :  { %p4007_p8 = scmp.ne.s32.totalorder %s5090_s3, %s4006_s29  ;;  %p4010_p9 = scmp.lt.u32.totalorder %s4006_s29, %s5090_s3 }
  0x1a   :  { %p4012_p10 = pnand %p4010_p9, %p4007_p8 }
  0x1c   :  { %4015 = shalt.err (!%p4012_p10)
}
  0x1d   :  { %s4016_s15 = scalar_lea.vmem %s59_s16, 64  ;;  %p4021_p12 = scmp.lt.s32.totalorder %s59_s16, %s59_s16 }
  0x1e   :  { %p4017_p11 = scmp.ne.s32.totalorder %s59_s16, %s4016_s15  ;;  %p4022_p13 = scmp.lt.s32.totalorder %s4016_s15, %s4016_s15 }
  0x20   :  { %p4023_p0 = por %p4022_p13, %p4021_p12 }
  0x22   :  { %p4024_p1 = pnand %p4023_p0, %p4017_p11 }
  0x24   :  { %4027 = shalt.err (!%p4024_p1)
}
  0x25   :  { %61 = dma.hbm_to_vmem [thread:$0]  %s5090_s3, 64, %s59_s16, [#allocation10]  }
  0x26   :  { %s4242_s17 = smov [#allocation12]   ;;  %s4243_s19 = smov [#allocation15]  }
  0x27   :  { %s78_s18 = sshll.u32 %s4242_s17, 4  ;;  %s100_s20 = sshll.u32 %s4243_s19, 4  ;;  %s79_s18 = int_to_ptr.vmem [resolvable:$true] %s78_s18  ;;  %s101_s20 = int_to_ptr.vmem [resolvable:$true] %s100_s20 }
  0x28   :  { %s4028_s23 = scalar_lea.hbm %s5092_s5, 16 }
  0x29   :  { %p4029_p2 = scmp.ne.s32.totalorder %s5092_s5, %s4028_s23  ;;  %p4032_p3 = scmp.lt.u32.totalorder %s4028_s23, %s5092_s5 }
  0x2b   :  { %p4034_p4 = pnand %p4032_p3, %p4029_p2 }
  0x2d   :  { %4037 = shalt.err (!%p4034_p4)
}
  0x2e   :  { %s4038_s3 = scalar_lea.vmem %s79_s18, 16  ;;  %s4042_s16 = scalar_lea.vmem %s79_s18, 32 }
  0x2f   :  { %p4039_p5 = scmp.ne.s32.totalorder %s79_s18, %s4038_s3  ;;  %p4043_p6 = scmp.lt.s32.totalorder %s79_s18, %s79_s18 }
  0x30   :  { %p4044_p7 = scmp.lt.s32.totalorder %s4042_s16, %s4038_s3 }
  0x32   :  { %p4045_p8 = por %p4044_p7, %p4043_p6 }
  0x34   :  { %p4046_p9 = pnand %p4045_p8, %p4039_p5 }
  0x36   :  { %4049 = shalt.err (!%p4046_p9)
}
  0x37   :  { %81 = dma.hbm_to_vmem [thread:$0]  %s5092_s5, 16, %s79_s18, [#allocation13]  }
  0x38   :  { %s4050_s12 = scalar_lea.hbm %s5094_s7, 16 }
  0x39   :  { %p4051_p10 = scmp.ne.s32.totalorder %s5094_s7, %s4050_s12  ;;  %p4054_p11 = scmp.lt.u32.totalorder %s4050_s12, %s5094_s7 }
  0x3b   :  { %p4056_p12 = pnand %p4054_p11, %p4051_p10 }
  0x3d   :  { %4059 = shalt.err (!%p4056_p12)
}
  0x3e   :  { %s4060_s17 = scalar_lea.vmem %s101_s20, 16  ;;  %s4064_s19 = scalar_lea.vmem %s101_s20, 32 }
  0x3f   :  { %p4061_p13 = scmp.ne.s32.totalorder %s101_s20, %s4060_s17  ;;  %p4065_p0 = scmp.lt.s32.totalorder %s101_s20, %s101_s20 }
  0x40   :  { %p4066_p1 = scmp.lt.s32.totalorder %s4064_s19, %s4060_s17 }
  0x42   :  { %p4067_p2 = por %p4066_p1, %p4065_p0 }
  0x44   :  { %p4068_p3 = pnand %p4067_p2, %p4061_p13 }
  0x46   :  { %4071 = shalt.err (!%p4068_p3)
}
  0x47   :  { %103 = dma.hbm_to_vmem [thread:$0]  %s5094_s7, 16, %s101_s20, [#allocation16]  }
  0x48   :  { %s4244_s21 = smov [#allocation3]   ;;  %s4245_s23 = smov [#allocation8]  }
  0x49   :  { %s28_s22 = sshll.u32 %s4244_s21, 4  ;;  %s48_s24 = sshll.u32 %s4245_s23, 4  ;;  %s29_s22 = int_to_ptr.vmem [resolvable:$true] %s28_s22  ;;  %s49_s24 = int_to_ptr.vmem [resolvable:$true] %s48_s24 }
  0x4a   :  { %s4072_s27 = scalar_lea.hbm %s5087_s0, 16 }
  0x4b   :  { %p4073_p4 = scmp.ne.s32.totalorder %s5087_s0, %s4072_s27  ;;  %p4076_p5 = scmp.lt.u32.totalorder %s4072_s27, %s5087_s0 }
  0x4d   :  { %p4078_p6 = pnand %p4076_p5, %p4073_p4 }
  0x4f   :  { %4081 = shalt.err (!%p4078_p6)
}
  0x50   :  { %s4082_s7 = scalar_lea.vmem %s29_s22, 16  ;;  %s4086_s20 = scalar_lea.vmem %s29_s22, 32 }
  0x51   :  { %p4083_p7 = scmp.ne.s32.totalorder %s29_s22, %s4082_s7  ;;  %p4087_p8 = scmp.lt.s32.totalorder %s29_s22, %s29_s22 }
  0x52   :  { %p4088_p9 = scmp.lt.s32.totalorder %s4086_s20, %s4082_s7 }
  0x54   :  { %p4089_p10 = por %p4088_p9, %p4087_p8 }
  0x56   :  { %p4090_p11 = pnand %p4089_p10, %p4083_p7 }
  0x58   :  { %4093 = shalt.err (!%p4090_p11)
}
  0x59   :  { %31 = dma.hbm_to_vmem [thread:$0]  %s5087_s0, 16, %s29_s22, [#allocation4]  }
  0x5a   :  { %s4094_s15 = scalar_lea.hbm %s5089_s2, 32 }
  0x5b   :  { %p4095_p12 = scmp.ne.s32.totalorder %s5089_s2, %s4094_s15  ;;  %p4098_p13 = scmp.lt.u32.totalorder %s4094_s15, %s5089_s2 }
  0x5d   :  { %p4100_p0 = pnand %p4098_p13, %p4095_p12 }
  0x5f   :  { %4103 = shalt.err (!%p4100_p0)
}
  0x60   :  { %s4104_s5 = scalar_lea.vmem %s49_s24, 32  ;;  %p4109_p2 = scmp.lt.s32.totalorder %s49_s24, %s49_s24 }
  0x61   :  { %p4105_p1 = scmp.ne.s32.totalorder %s49_s24, %s4104_s5  ;;  %p4110_p3 = scmp.lt.s32.totalorder %s4104_s5, %s4104_s5 }
  0x63   :  { %p4111_p4 = por %p4110_p3, %p4109_p2 }
  0x65   :  { %p4112_p5 = pnand %p4111_p4, %p4105_p1 }
  0x67   :  { %4115 = shalt.err (!%p4112_p5)
}
  0x68   :  { %51 = dma.hbm_to_vmem [thread:$0]  %s5089_s2, 32, %s49_s24, [#allocation7]  }
  0x69   :  { %s4246_s21 = smov [#allocation11]   ;;  %s4247_s23 = smov [#allocation14]  }
  0x6a   :  { %s68_s22 = sshll.u32 %s4246_s21, 4  ;;  %s87_s25 = sshll.u32 %s4247_s23, 4  ;;  %s69_s22 = int_to_ptr.vmem [resolvable:$true] %s68_s22  ;;  %s4384_s25 = int_to_ptr.vmem [resolvable:$true] %s87_s25 }
  0x6b   :  { %s4116_s3 = scalar_lea.hbm %s5091_s4, 64 }
  0x6c   :  { %p4117_p6 = scmp.ne.s32.totalorder %s5091_s4, %s4116_s3  ;;  %p4120_p7 = scmp.lt.u32.totalorder %s4116_s3, %s5091_s4 }
  0x6e   :  { %p4122_p8 = pnand %p4120_p7, %p4117_p6 }
  0x70   :  { %4125 = shalt.err (!%p4122_p8)
}
  0x71   :  { %s4126_s2 = scalar_lea.vmem %s69_s22, 64  ;;  %p4131_p10 = scmp.lt.s32.totalorder %s69_s22, %s69_s22 }
  0x72   :  { %p4127_p9 = scmp.ne.s32.totalorder %s69_s22, %s4126_s2  ;;  %p4132_p11 = scmp.lt.s32.totalorder %s4126_s2, %s4126_s2 }
  0x74   :  { %p4133_p12 = por %p4132_p11, %p4131_p10 }
  0x76   :  { %p4134_p13 = pnand %p4133_p12, %p4127_p9 }
  0x78   :  { %4137 = shalt.err (!%p4134_p13)
}
  0x79   :  { %71 = dma.hbm_to_vmem [thread:$0]  %s5091_s4, 64, %s69_s22, [#allocation10]  }
  0x7a   :  { %s4138_s12 = scalar_lea.hbm %s5093_s6, 2048 }
  0x7b   :  { %p4139_p0 = scmp.ne.s32.totalorder %s5093_s6, %s4138_s12  ;;  %p4142_p1 = scmp.lt.u32.totalorder %s4138_s12, %s5093_s6 }
  0x7d   :  { %p4144_p2 = pnand %p4142_p1, %p4139_p0 }
  0x7f   :  { %4147 = shalt.err (!%p4144_p2)
}
  0x80   :  { %s4148_s17 = scalar_lea.vmem %s4384_s25, 2048  ;;  %p4153_p4 = scmp.lt.s32.totalorder %s4384_s25, %s4384_s25 }
  0x81   :  { %p4149_p3 = scmp.ne.s32.totalorder %s4384_s25, %s4148_s17  ;;  %p4154_p5 = scmp.lt.s32.totalorder %s4148_s17, %s4148_s17 }
  0x83   :  { %p4155_p6 = por %p4154_p5, %p4153_p4 }
  0x85   :  { %p4156_p7 = pnand %p4155_p6, %p4149_p3 }
  0x87   :  { %4159 = shalt.err (!%p4156_p7)
}
  0x88   :  { %s4248_s4 = smov 128   ;;  %s4249_s19 = smov 8  }
  0x89   :  { %93 = dma.hbm_to_vmem [thread:$0]  %s5093_s6, 2048, %s4384_s25, [#allocation13], %s4248_s4, %s4248_s4, %s4249_s19  }
  0x8a   :  { %s4250_s18 = smov [#allocation17]   ;;  %s4251_s22 = smov [#allocation18]  }
  0x8b   :  { %s109_s21 = sshll.u32 %s4250_s18, 4  ;;  %s122_s23 = sshll.u32 %s4251_s22, 4  ;;  %s110_s21 = int_to_ptr.vmem [resolvable:$true] %s109_s21  ;;  %s123_s23 = int_to_ptr.vmem [resolvable:$true] %s122_s23 }
  0x8c   :  { %s4160_s3 = scalar_lea.hbm %s5095_s8, 2048 }
  0x8d   :  { %p4161_p8 = scmp.ne.s32.totalorder %s5095_s8, %s4160_s3  ;;  %p4164_p9 = scmp.lt.u32.totalorder %s4160_s3, %s5095_s8 }
  0x8f   :  { %p4166_p10 = pnand %p4164_p9, %p4161_p8 }
  0x91   :  { %4169 = shalt.err (!%p4166_p10)
}
  0x92   :  { %s4170_s6 = scalar_lea.vmem %s110_s21, 2048  ;;  %p4175_p12 = scmp.lt.s32.totalorder %s110_s21, %s110_s21 }
  0x93   :  { %p4171_p11 = scmp.ne.s32.totalorder %s110_s21, %s4170_s6  ;;  %p4176_p13 = scmp.lt.s32.totalorder %s4170_s6, %s4170_s6 }
  0x95   :  { %p4177_p0 = por %p4176_p13, %p4175_p12 }
  0x97   :  { %p4178_p1 = pnand %p4177_p0, %p4171_p11 }
  0x99   :  { %4181 = shalt.err (!%p4178_p1)
}
  0x9a   :  { %115 = dma.hbm_to_vmem [thread:$0]  %s5095_s8, 2048, %s110_s21, [#allocation16], %s4248_s4, %s4248_s4, %s4249_s19  }
  0x9b   :  { %s4182_s30 = scalar_lea.hbm %s5096_s9, 16 }
  0x9c   :  { %p4183_p2 = scmp.ne.s32.totalorder %s5096_s9, %s4182_s30  ;;  %p4186_p3 = scmp.lt.u32.totalorder %s4182_s30, %s5096_s9 }
  0x9e   :  { %p4188_p4 = pnand %p4186_p3, %p4183_p2 }
  0xa0   :  { %4191 = shalt.err (!%p4188_p4)
}
  0xa1   :  { %s4192_s1 = scalar_lea.vmem %s123_s23, 16  ;;  %s4196_s14 = scalar_lea.vmem %s123_s23, 32 }
  0xa2   :  { %p4193_p5 = scmp.ne.s32.totalorder %s123_s23, %s4192_s1  ;;  %p4197_p6 = scmp.lt.s32.totalorder %s123_s23, %s123_s23 }
  0xa3   :  { %p4198_p7 = scmp.lt.s32.totalorder %s4196_s14, %s4192_s1 }
  0xa5   :  { %p4199_p8 = por %p4198_p7, %p4197_p6 }
  0xa7   :  { %p4200_p9 = pnand %p4199_p8, %p4193_p5 }
  0xa9   :  { %4203 = shalt.err (!%p4200_p9)
}
  0xaa   :  { %125 = dma.hbm_to_vmem [thread:$0]  %s5096_s9, 16, %s123_s23, [#allocation19]  }
  0xab   :  { %4226 = dma.done.wait [#allocation4], 16  }
  0xac   :  { %4227 = vsyncadd [#allocation4], 4294967280 }
  0xad   :  { %4228 = dma.done.wait [#allocation7], 96  }
  0xae   :  { %4229 = vsyncadd [#allocation7], 4294967200 }
  0xaf   :  { %4230 = dma.done.wait [#allocation10], 128  }
  0xb0   :  { %4231 = vsyncadd [#allocation10], 4294967168 }
  0xb1   :  { %4232 = dma.done.wait [#allocation13], 2064  }
  0xb2   :  { %4233 = vsyncadd [#allocation13], 4294965232 }
  0xb3   :  { %4234 = dma.done.wait [#allocation16], 2064  }
  0xb4   :  { %4235 = vsyncadd [#allocation16], 4294965232 }
  0xb5   :  { %4236 = dma.done.wait [#allocation19], 16  }
  0xb6   :  { %4237 = vsyncadd [#allocation19], 4294967280  ;;  %v163_v0 = vlaneseq  ;;  %v4252_v1 = vmov 0.0   ;;  %vm4253_vm0 = vmmov 0   ;;  %v173_v3 = vld [vmem:[#allocation6] sm:$0xf] }
  0xb7   :  { %3147 = vmatprep.subr.mxu0 %v4252_v1  ;;  %3152 = vmatprep.subr.mxu1 %v4252_v1  ;;  %v2899_v4 = vld [vmem:[#allocation3] ss:$0 sm:$0xff]  ;;  %v175_v5 = vand.u32 4294901760, %v173_v3  ;;  %v4254_v15 = vmov 1.0   ;;  %vm160_vm2 = vcmask 25600   ;;  %vm634_vm3 = vcmask 1043456  }
  0xb8   :  { %3149 = vmatprep.mubr.msk.f32.mxu0 %vm4253_vm0, %v4252_v1  ;;  %3154 = vmatprep.mubr.msk.f32.mxu1 %vm4253_vm0, %v4252_v1  ;;  %v164_v2 = vshrl.u32 %v163_v0, 7  ;;  %161 = vst.msk [vmem:[#allocation2] sm:$0x3] %vm160_vm2, %v4252_v1  ;;  %v629_v16 = vld [vmem:[#allocation11] sm:$0xf]  ;;  %vm630_vm4 = vcmask 31744  }
  0xb9   :  { %3148 = vmatpush3.xpose.msra.mxu0 %v175_v5  ;;  %v252_v7 = vsub.f32 %v173_v3, %v175_v5  ;;  %v636_v17 = vsel %vm634_vm3, %v629_v16, 0  ;;  %v628_v39 = vld [vmem:[#allocation9] sm:$0xf]  ;;  %v627_v45 = vld [vmem:[#allocation8] sm:$0x3]  ;;  %v1547_v63 = vld [vmem:[#allocation14] sm:$0xff] }
  0xba   :  { %vm169_vm1 = vcmp.eq.s32.totalorder %v164_v2, %v2899_v4  ;;  %3157 = vmatprep.subr.mxu0 %v4252_v1  ;;  %v639_v18 = vand.u32 4294901760, %v636_v17  ;;  %v1088_v43 = vsel %vm634_vm3, %v628_v39, 0  ;;  %v1085_v49 = vsel %vm630_vm4, %v627_v45, 0  ;;  %v1548_v0 = vld [vmem:[#allocation14 + $0x8] sm:$0xff]  ;;  %v1559_v39 = vld [vmem:[#allocation14 + $0x60] sm:$0xff]  ;;  %v1562_v45 = vld [vmem:[#allocation14 + $0x78] sm:$0xff] }
  0xbb   :  { %v2900_v6 = vsel %vm169_vm1, 1.0, %v4252_v1  ;;  %v253_v9 = vand.u32 4294901760, %v252_v7  ;;  %v1091_v44 = vand.u32 4294901760, %v1088_v43  ;;  %v1156_v53 = vand.u32 4294901760, %v1085_v49  ;;  %s4256_s9 = smov [#allocation20]  }
  0xbc   :  { %v241_v8 = vsub.f32 %v2900_v6, %v2900_v6  ;;  %v4471_v19 = vsub.f32 %v636_v17, %v639_v18  ;;  %v1571_v2 = vand.u32 4294901760, %v1547_v63  ;;  %v1574_v3 = vand.u32 4294901760, %v1548_v0  ;;  %v1549_v6 = vld [vmem:[#allocation14 + $0x10] sm:$0xff]  ;;  %s2885_s4 = sshll.u32 %s4256_s9, 4  ;;  %s2886_s4 = int_to_ptr.vmem [resolvable:$true] %s2885_s4 }
  0xbd   :  { %v254_v11 = vsub.f32 %v252_v7, %v253_v9  ;;  %v1168_v46 = vsub.f32 %v1088_v43, %v1091_v44  ;;  %v1157_v56 = vsub.f32 %v1085_v49, %v1156_v53  ;;  %v4255_v4 = vmov 0.0|0.0   ;;  %s4204_s19 = scalar_lea.vmem %s2886_s4, 32  ;;  %p4209_p11 = scmp.lt.s32.totalorder %s2886_s4, %s2886_s4 }
  0xbe   :  { %v242_v10 = vand.u32 4294901760, %v241_v8  ;;  %v717_v20 = vand.u32 4294901760, %v4471_v19  ;;  %p4205_p10 = scmp.ne.s32.totalorder %s2886_s4, %s4204_s19  ;;  %p4210_p12 = scmp.lt.s32.totalorder %s4204_s19, %s4204_s19 }
  0xbf   :  { %v255_v13 = vand.u32 4294901760, %v254_v11  ;;  %v172_v37 = vld [vmem:[#allocation2] sm:$0x3]  ;;  %v1169_v51 = vand.u32 4294901760, %v1168_v46  ;;  %v1158_v60 = vand.u32 4294901760, %v1157_v56  ;;  %v4523_v11 = vsub.f32 %v1548_v0, %v1574_v3 }
  0xc0   :  { %v243_v12 = vsub.f32 %v241_v8, %v242_v10  ;;  %v718_v21 = vsub.f32 %v4471_v19, %v717_v20  ;;  %p4211_p13 = por %p4210_p12, %p4209_p11 }
  0xc1   :  { %3153 = vmatpush3.xpose.msra.mxu1 %v255_v13  ;;  %v1170_v55 = vsub.f32 %v1168_v46, %v1169_v51  ;;  %v1159_v61 = vsub.f32 %v1157_v56, %v1158_v60  ;;  %v1551_v13 = vld [vmem:[#allocation14 + $0x20] sm:$0xff] }
  0xc2   :  { %v244_v14 = vand.u32 4294901760, %v243_v12  ;;  %3162 = vmatprep.subr.mxu1 %v4252_v1  ;;  %v719_v22 = vand.u32 4294901760, %v718_v21  ;;  %v1554_v21 = vld [vmem:[#allocation14 + $0x38] sm:$0xff]  ;;  %p4212_p0 = pnand %p4211_p13, %p4205_p10 }
  0xc3   :  { %v1171_v59 = vand.u32 4294901760, %v1170_v55  ;;  %v1160_v62 = vand.u32 4294901760, %v1159_v61  ;;  %v5112_v55 = vand.u32 4294901760, %v4523_v11 }
  0xc4   :  { %3150 = vmatmul.mubr.f32.vlgmr.msra.gmra.mrb[0].mxu0 %v244_v14  ;;  %3155 = vmatmul.mubr.msk.f32.vlgmr.msra.gmra.mrb[0].mxu1 %vm169_vm1, %v4254_v15  ;;  %v1552_v14 = vld [vmem:[#allocation14 + $0x28] sm:$0xff] }
  0xc5   :  { %3158 = vmatpush3.xpose.msra.mxu0 %v252_v7  ;;  %3159 = vmatprep.mubr.msk.f32.mxu0 %vm4253_vm0, %v4252_v1  ;;  %v1550_v7 = vld [vmem:[#allocation14 + $0x18] sm:$0xff]  ;;  %v1586_v16 = vand.u32 4294901760, %v1552_v14 }
  0xc6   :  { %3167 = vmatprep.subr.mxu0 %v4252_v1  ;;  %3163 = vmatpush3.xpose.msra.mxu1 %v175_v5 }
  0xc7   :  { %3164 = vmatprep.mubr.msk.f32.mxu1 %vm4253_vm0, %v4252_v1  ;;  %3172 = vmatprep.subr.mxu1 %v4252_v1 }
  0xc8   :  { %3160 = vmatmul.mubr.f32.vlgmr.msra.gmra.mrb[2].mxu0 %v241_v8  ;;  %v1577_v8 = vand.u32 4294901760, %v1549_v6 }
  0xc9   :  { %3168 = vmatpush3.xpose.msra.mxu0 %v253_v9  ;;  %3169 = vmatprep.mubr.msk.f32.mxu0 %vm4253_vm0, %v4252_v1  ;;  %v1580_v9 = vand.u32 4294901760, %v1550_v7 }
  0xca   :  { %3165 = vmatmul.mubr.f32.vlgmr.msra.gmra.mrb[2].mxu1 %v242_v10  ;;  %3177 = vmatprep.subr.mxu0 %v4252_v1  ;;  %v4521_v10 = vsub.f32 %v1547_v63, %v1571_v2  ;;  %v4529_v17 = vsub.f32 %v1549_v6, %v1577_v8 }
  0xcb   :  { %3173 = vmatpush3.xpose.msra.mxu1 %v175_v5  ;;  %3174 = vmatprep.mubr.msk.f32.mxu1 %vm4253_vm0, %v4252_v1  ;;  %v4517_v5 = vpack.c.bf16 %v1574_v3, %v1571_v2  ;;  %v4526_v12 = vpack.c.bf16 %v1580_v9, %v1577_v8 }
  0xcc   :  { %3170 = vmatmul.mubr.msk.f32.vlgmr.msra.gmra.mrb[4].mxu0 %vm169_vm1, %v4254_v15  ;;  %3182 = vmatprep.subr.mxu1 %v4252_v1  ;;  %v5111_v61 = vand.u32 4294901760, %v4529_v17 }
  0xcd   :  { %3179 = vmatprep.mubr.msk.f32.mxu0 %vm4253_vm0, %v4252_v1  ;;  %3178 = vmatpush3.msra.mxu0 %v639_v18 }
  0xce   :  { %3175 = vmatmul.mubr.msk.f32.vlgmr.msra.gmra.mrb[4].mxu1 %vm169_vm1, %v4254_v15  ;;  %3187 = vmatprep.subr.mxu0 %v4252_v1  ;;  %v1583_v15 = vand.u32 4294901760, %v1551_v13  ;;  %v1679_v2 = vsub.f32 %v4529_v17, %v5111_v61 }
  0xcf   :  { %3184 = vmatprep.mubr.msk.f32.mxu1 %vm4253_vm0, %v4252_v1  ;;  %3183 = vmatpush3.msra.mxu1 %v719_v22 }
  0xd0   :  { %3192 = vmatprep.subr.mxu1 %v4252_v1 }
 0x197   :  { %v246_v23 = vpop.f32.mrb[0].mxu0  ;;  %v322_v25 = vpop.f32.mrb[0].mxu1 }
 0x198   :  { %v3151_v24 = vpop.f32.mrb[1].mxu0  ;;  %v323_v26 = vadd.f32 %v322_v25, %v246_v23  ;;  %v3156_v27 = vpop.f32.mrb[1].mxu1  ;;  %v1592_v23 = vand.u32 4294901760, %v1554_v21  ;;  %v4539_v25 = vsub.f32 %v1552_v14, %v1586_v16 }
 0x199   :  { %v4537_v24 = vsub.f32 %v1551_v13, %v1583_v15  ;;  %v1555_v27 = vld [vmem:[#allocation14 + $0x40] sm:$0xff] }
 0x19a   :  { %v5108_v13 = vand.u32 4294901760, %v4539_v25 }
 0x19b   :  { %v396_v28 = vpop.f32.mrb[2].mxu0 }
 0x19c   :  { %v3161_v29 = vpop.f32.mrb[3].mxu0  ;;  %v397_v30 = vadd.f32 %v396_v28, %v323_v26  ;;  %v1556_v28 = vld [vmem:[#allocation14 + $0x48] sm:$0xff] }
 0x19d   :  { %v470_v31 = vpop.f32.mrb[2].mxu1  ;;  %v1595_v29 = vand.u32 4294901760, %v1555_v27 }
 0x19e   :  { %v471_v32 = vadd.f32 %v470_v31, %v397_v30  ;;  %v3166_v33 = vpop.f32.mrb[3].mxu1  ;;  %v1598_v30 = vand.u32 4294901760, %v1556_v28 }
 0x19f   :  { %v544_v34 = vpop.f32.mrb[4].mxu0 }
 0x1a0   :  { %v3171_v35 = vpop.f32.mrb[5].mxu0  ;;  %v545_v36 = vadd.f32 %v544_v34, %v471_v32  ;;  %v4547_v32 = vsub.f32 %v1554_v21, %v1592_v23  ;;  %v4550_v33 = vpack.c.bf16 %v1598_v30, %v1595_v29  ;;  %v1557_v34 = vld [vmem:[#allocation14 + $0x50] sm:$0xff] }
 0x1a1   :  { %v616_v38 = vpop.f32.mrb[4].mxu1  ;;  %v1558_v35 = vld [vmem:[#allocation14 + $0x58] sm:$0xff] }
 0x1a2   :  { %v617_v40 = vadd.f32 %v616_v38, %v545_v36  ;;  %v3176_v41 = vpop.f32.mrb[5].mxu1  ;;  %v1601_v36 = vand.u32 4294901760, %v1557_v34 }
 0x1a3   :  { %v1607_v41 = vand.u32 4294901760, %v1559_v39 }
 0x1a4   :  { %v620_v42 = vadd.f32 %v617_v40, %v172_v37  ;;  %v1604_v37 = vand.u32 4294901760, %v1558_v35  ;;  %v1560_v40 = vld [vmem:[#allocation14 + $0x68] sm:$0xff] }
 0x1a6   :  { %622 = vst.msk [vmem:[#allocation2] sm:$0x3] %vm160_vm2, %v620_v42  ;;  %v4554_v38 = vpack.c.bf16 %v1604_v37, %v1601_v36  ;;  %v1610_v42 = vand.u32 4294901760, %v1560_v40  ;;  %v4566_v49 = vsub.f32 %v1558_v35, %v1604_v37 }
 0x1a8   :  { %v4558_v43 = vpack.c.bf16 %v1610_v42, %v1607_v41 }
 0x1ad   :  { %v626_v47 = vld [vmem:[#allocation2] sm:$0x3] }
 0x1ae   :  { %v632_v48 = vsel %vm630_vm4, %v626_v47, 0  ;;  %v4562_v47 = vsub.f32 %v1556_v28, %v1598_v30 }
 0x1af   :  { %v704_v50 = vand.u32 4294901760, %v632_v48 }
 0x1b1   :  { %v705_v52 = vsub.f32 %v632_v48, %v704_v50  ;;  %3185 = vmatmul.mubr.f32.vlgmr.msra.gmra.mrb[6].mxu1 %v704_v50  ;;  %v4564_v48 = vsub.f32 %v1557_v34, %v1601_v36  ;;  %v5104_v36 = vand.u32 4294901760, %v4562_v47 }
 0x1b2   :  { %3193 = vmatpush3.msra.mxu1 %v639_v18  ;;  %3194 = vmatprep.mubr.msk.f32.mxu1 %vm4253_vm0, %v4252_v1 }
 0x1b3   :  { %v706_v54 = vand.u32 4294901760, %v705_v52  ;;  %3202 = vmatprep.subr.mxu1 %v4252_v1 }
 0x1b5   :  { %3195 = vmatmul.mubr.f32.vlgmr.msra.gmra.mrb[8].mxu1 %v706_v54  ;;  %v707_v57 = vsub.f32 %v705_v52, %v706_v54  ;;  %v5113_v54 = vand.u32 4294901760, %v4521_v10 }
 0x1b6   :  { %3203 = vmatpush3.msra.mxu1 %v639_v18  ;;  %3204 = vmatprep.mubr.msk.f32.mxu1 %vm4253_vm0, %v4252_v1  ;;  %v4531_v18 = vsub.f32 %v1550_v7, %v1580_v9  ;;  %v1680_v7 = vand.u32 4294901760, %v1679_v2  ;;  %v5109_v9 = vand.u32 4294901760, %v4537_v24 }
 0x1b7   :  { %v708_v58 = vand.u32 4294901760, %v707_v57  ;;  %3212 = vmatprep.subr.mxu1 %v4252_v1 }
 0x1b9   :  { %3180 = vmatmul.mubr.f32.vlgmr.msra.gmra.mrb[6].mxu0 %v708_v58  ;;  %3205 = vmatmul.mubr.f32.vlgmr.msra.gmra.mrb[10].mxu1 %v704_v50 }
 0x1ba   :  { %3188 = vmatpush3.msra.mxu0 %v4471_v19  ;;  %3189 = vmatprep.mubr.msk.f32.mxu0 %vm4253_vm0, %v4252_v1  ;;  %v4534_v19 = vpack.c.bf16 %v1586_v16, %v1583_v15  ;;  %v1693_v15 = vsub.f32 %v4537_v24, %v5109_v9  ;;  %v1700_v16 = vsub.f32 %v4539_v25, %v5108_v13 }
 0x1bb   :  { %3197 = vmatprep.subr.mxu0 %v4252_v1  ;;  %3213 = vmatpush3.msra.mxu1 %v1171_v59  ;;  %v1665_v59 = vsub.f32 %v4521_v10, %v5113_v54 }
 0x1bc   :  { %3214 = vmatprep.mubr.msk.f32.mxu1 %vm4253_vm0, %v4252_v1  ;;  %3222 = vmatprep.subr.mxu1 %v4252_v1  ;;  %v1701_v21 = vand.u32 4294901760, %v1700_v16 }
 0x1bd   :  { %3190 = vmatmul.mubr.f32.vlgmr.msra.gmra.mrb[8].mxu0 %v705_v52  ;;  %3215 = vmatmul.mubr.f32.vlgmr.msra.gmra.mrb[12].mxu1 %v1156_v53  ;;  %v1666_v63 = vand.u32 4294901760, %v1665_v59 }
 0x1be   :  { %3198 = vmatpush3.msra.mxu0 %v717_v20  ;;  %3199 = vmatprep.mubr.msk.f32.mxu0 %vm4253_vm0, %v4252_v1  ;;  %v1553_v20 = vld [vmem:[#allocation14 + $0x30] sm:$0xff] }
 0x1bf   :  { %3207 = vmatprep.subr.mxu0 %v4252_v1  ;;  %3223 = vmatpush3.msra.mxu1 %v1091_v44  ;;  %v1589_v22 = vand.u32 4294901760, %v1553_v20 }
 0x1c0   :  { %3224 = vmatprep.mubr.msk.f32.mxu1 %vm4253_vm0, %v4252_v1  ;;  %3232 = vmatprep.subr.mxu1 %v4252_v1 }
 0x1c1   :  { %3200 = vmatmul.mubr.f32.vlgmr.msra.gmra.mrb[10].mxu0 %v704_v50  ;;  %3225 = vmatmul.mubr.f32.vlgmr.msra.gmra.mrb[14].mxu1 %v1158_v60  ;;  %v4542_v26 = vpack.c.bf16 %v1592_v23, %v1589_v22  ;;  %v4545_v31 = vsub.f32 %v1553_v20, %v1589_v22  ;;  %v4569_v50 = vsub.f32 %v1559_v39, %v1607_v41  ;;  %v1694_v20 = vand.u32 4294901760, %v1693_v15 }
 0x1c2   :  { %3208 = vmatpush3.msra.mxu0 %v1091_v44  ;;  %3209 = vmatprep.mubr.msk.f32.mxu0 %vm4253_vm0, %v4252_v1  ;;  %v1672_v60 = vsub.f32 %v4523_v11, %v5112_v55  ;;  %v5106_v23 = vand.u32 4294901760, %v4547_v32 }
 0x1c3   :  { %3217 = vmatprep.subr.mxu0 %v4252_v1  ;;  %3233 = vmatpush3.msra.mxu1 %v1091_v44  ;;  %v1561_v44 = vld [vmem:[#allocation14 + $0x70] sm:$0xff]  ;;  %v5107_v22 = vand.u32 4294901760, %v4545_v31 }
 0x1c4   :  { %3234 = vmatprep.mubr.msk.f32.mxu1 %vm4253_vm0, %v4252_v1  ;;  %3801 = vmatprep.subr.bf16.mxu1 %v4255_v4  ;;  %v1613_v52 = vand.u32 4294901760, %v1561_v44  ;;  %v1673_v0 = vand.u32 4294901760, %v1672_v60 }
 0x1c5   :  { %3210 = vmatmul.mubr.f32.vlgmr.msra.gmra.mrb[12].mxu0 %v1160_v62  ;;  %3235 = vmatmul.mubr.f32.vlgmr.msra.gmra.mrb[16].mxu1 %v1156_v53  ;;  %v5110_v62 = vand.u32 4294901760, %v4531_v18  ;;  %v1707_v28 = vsub.f32 %v4545_v31, %v5107_v22 }
 0x1c6   :  { %3218 = vmatpush3.msra.mxu0 %v1168_v46  ;;  %3219 = vmatprep.mubr.msk.f32.mxu0 %vm4253_vm0, %v4252_v1  ;;  %v4560_v46 = vsub.f32 %v1555_v27, %v1595_v29  ;;  %v4578_v57 = vsub.f32 %v1561_v44, %v1613_v52  ;;  %v4598_v6 = vpack.c.bf16 %v1673_v0, %v1666_v63  ;;  %v5103_v44 = vand.u32 4294901760, %v4564_v48 }
 0x1c7   :  { %3227 = vmatprep.subr.mxu0 %v4252_v1  ;;  %3479 = vmatprep.mubr.msk.f32.mxu1 %vm4253_vm0, %v4252_v1  ;;  %v1686_v3 = vsub.f32 %v4531_v18, %v5110_v62  ;;  %v4612_v27 = vpack.c.bf16 %v1701_v21, %v1694_v20  ;;  %v1714_v29 = vsub.f32 %v4547_v32, %v5106_v23  ;;  %v1708_v30 = vand.u32 4294901760, %v1707_v28 }
 0x1c8   :  { %v5105_v35 = vand.u32 4294901760, %v4560_v46  ;;  %v5101_v0 = vand.u32 4294901760, %v4569_v50  ;;  %v5099_v20 = vand.u32 4294901760, %v4578_v57 }
 0x1c9   :  { %3220 = vmatmul.mubr.f32.vlgmr.msra.gmra.mrb[14].mxu0 %v1157_v56  ;;  %v1687_v8 = vand.u32 4294901760, %v1686_v3  ;;  %v1715_v34 = vand.u32 4294901760, %v1714_v29 }
 0x1ca   :  { %3228 = vmatpush3.msra.mxu0 %v1169_v51  ;;  %3229 = vmatprep.mubr.msk.f32.mxu0 %vm4253_vm0, %v4252_v1  ;;  %v4571_v51 = vsub.f32 %v1560_v40, %v1610_v42  ;;  %v1721_v39 = vsub.f32 %v4560_v46, %v5105_v35  ;;  %v1728_v40 = vsub.f32 %v4562_v47, %v5104_v36 }
 0x1cb   :  { %3657 = vmatprep.subr.bf16.mxu0 %v4255_v4  ;;  %v4602_v14 = vpack.c.bf16 %v1687_v8, %v1680_v7  ;;  %v4622_v37 = vpack.c.bf16 %v1715_v34, %v1708_v30  ;;  %v1749_v7 = vsub.f32 %v4569_v50, %v5101_v0  ;;  %v1763_v29 = vsub.f32 %v4578_v57, %v5099_v20 }
 0x1cc   :  { %v1722_v41 = vand.u32 4294901760, %v1721_v39  ;;  %v1729_v42 = vand.u32 4294901760, %v1728_v40  ;;  %v5100_v2 = vand.u32 4294901760, %v4571_v51 }
 0x1cd   :  { %3230 = vmatmul.mubr.f32.vlgmr.msra.gmra.mrb[16].mxu0 %v1156_v53  ;;  %v1616_v53 = vand.u32 4294901760, %v1562_v45  ;;  %v1750_v15 = vand.u32 4294901760, %v1749_v7  ;;  %v1764_v34 = vand.u32 4294901760, %v1763_v29 }
 0x1ce   :  { %3269 = vmatprep.mubr.msk.f32.mxu0 %vm4253_vm0, %v4252_v1  ;;  %3659 = vmatpush3.bf16.msra.mxu0 %v4517_v5  ;;  %v1756_v8 = vsub.f32 %v4571_v51, %v5100_v2 }
 0x1cf   :  { %3660 = vmatprep.subr.bf16.mxu0 %v4255_v4  ;;  %v4576_v56 = vpack.c.bf16 %v1616_v53, %v1613_v52  ;;  %v4580_v58 = vsub.f32 %v1562_v45, %v1616_v53  ;;  %v5102_v45 = vand.u32 4294901760, %v4566_v49  ;;  %v4632_v52 = vpack.c.bf16 %v1729_v42, %v1722_v41 }
 0x1d0   :  { %v1735_v53 = vsub.f32 %v4564_v48, %v5103_v44  ;;  %v1757_v16 = vand.u32 4294901760, %v1756_v8  ;;  %v3706_v41 = vpack.c.bf16 %v4523_v11, %v4521_v10  ;;  %v3709_v42 = vpack.c.bf16 %v4531_v18, %v4529_v17 }
 0x1d1   :  { %v1742_v59 = vsub.f32 %v4566_v49, %v5102_v45  ;;  %v5098_v21 = vand.u32 4294901760, %v4580_v58 }
 0x1d2   :  { %3662 = vmatpush3.bf16.msra.mxu0 %v4526_v12  ;;  %v1736_v60 = vand.u32 4294901760, %v1735_v53  ;;  %v4652_v28 = vpack.c.bf16 %v1757_v16, %v1750_v15  ;;  %v3712_v53 = vpack.c.bf16 %v4539_v25, %v4537_v24 }
 0x1d3   :  { %3663 = vmatprep.subr.bf16.mxu0 %v4255_v4  ;;  %v1743_v63 = vand.u32 4294901760, %v1742_v59  ;;  %v1770_v30 = vsub.f32 %v4580_v58, %v5098_v21  ;;  %v3715_v59 = vpack.c.bf16 %v4547_v32, %v4545_v31 }
 0x1d5   :  { %v4642_v3 = vpack.c.bf16 %v1743_v63, %v1736_v60  ;;  %v1771_v39 = vand.u32 4294901760, %v1770_v30  ;;  %v3718_v60 = vpack.c.bf16 %v4562_v47, %v4560_v46 }
 0x1d6   :  { %3665 = vmatpush3.bf16.msra.mxu0 %v4534_v19 }
 0x1d7   :  { %3666 = vmatprep.subr.bf16.mxu0 %v4255_v4  ;;  %v4660_v40 = vpack.c.bf16 %v1771_v39, %v1764_v34 }
 0x1da   :  { %3668 = vmatpush3.bf16.msra.mxu0 %v4542_v26 }
 0x1db   :  { %3669 = vmatprep.subr.bf16.mxu0 %v4255_v4 }
 0x1de   :  { %3671 = vmatpush3.bf16.msra.mxu0 %v4550_v33 }
 0x1df   :  { %3672 = vmatprep.subr.bf16.mxu0 %v4255_v4 }
 0x1e2   :  { %3674 = vmatpush3.bf16.msra.mxu0 %v4554_v38 }
 0x1e3   :  { %3675 = vmatprep.subr.bf16.mxu0 %v4255_v4 }
 0x1e6   :  { %3677 = vmatpush3.bf16.msra.mxu0 %v4558_v43 }
 0x1e7   :  { %3678 = vmatprep.subr.bf16.mxu0 %v4255_v4 }
 0x1ea   :  { %3680 = vmatpush3.bf16.msra.mxu0 %v4576_v56 }
 0x1eb   :  { %3681 = vmatprep.subr.bf16.mxu0 %v4255_v4 }
 0x284   :  { %v786_v15 = vpop.f32.mrb[6].mxu1 }
 0x285   :  { %v3186_v16 = vpop.f32.mrb[7].mxu1 }
 0x288   :  { %v934_v29 = vpop.f32.mrb[8].mxu1 }
 0x289   :  { %v3196_v30 = vpop.f32.mrb[9].mxu1 }
 0x28c   :  { %v710_v34 = vpop.f32.mrb[6].mxu0  ;;  %v1080_v39 = vpop.f32.mrb[10].mxu1 }
 0x28d   :  { %v787_v21 = vadd.f32 %v786_v15, %v710_v34  ;;  %v3181_v20 = vpop.f32.mrb[7].mxu0  ;;  %v3206_v2 = vpop.f32.mrb[11].mxu1 }
 0x290   :  { %v860_v0 = vpop.f32.mrb[8].mxu0  ;;  %v1238_v45 = vpop.f32.mrb[12].mxu1 }
 0x291   :  { %v861_v44 = vadd.f32 %v860_v0, %v787_v21  ;;  %v3191_v36 = vpop.f32.mrb[9].mxu0  ;;  %v3216_v35 = vpop.f32.mrb[13].mxu1 }
 0x293   :  { %v935_v23 = vadd.f32 %v934_v29, %v861_v44  ;;  %v2904_v44 = vld [vmem:[#allocation12] ss:$0 sm:$0xff] }
 0x294   :  { %v1008_v22 = vpop.f32.mrb[10].mxu0  ;;  %v1386_v13 = vpop.f32.mrb[14].mxu1 }
 0x295   :  { %v1009_v9 = vadd.f32 %v1008_v22, %v935_v23  ;;  %v3201_v62 = vpop.f32.mrb[11].mxu0  ;;  %v3226_v61 = vpop.f32.mrb[15].mxu1 }
 0x297   :  { %v1081_v55 = vadd.f32 %v1080_v39, %v1009_v9  ;;  %v2221_v39 = vld [vmem:[#allocation17 + $0x38] sm:$0xff] }
 0x298   :  { %v1162_v16 = vpop.f32.mrb[12].mxu0  ;;  %v1532_v54 = vpop.f32.mrb[16].mxu1 }
 0x299   :  { %v1163_v30 = vadd.f32 %v1162_v16, %v1081_v55  ;;  %v3211_v8 = vpop.f32.mrb[13].mxu0  ;;  %v3236_v7 = vpop.f32.mrb[17].mxu1 }
 0x29a   :  { %v2220_v8 = vld [vmem:[#allocation17 + $0x30] sm:$0xff] }
 0x29b   :  { %v1239_v15 = vadd.f32 %v1238_v45, %v1163_v30  ;;  %v2217_v45 = vld [vmem:[#allocation17 + $0x18] sm:$0xff] }
 0x29c   :  { %v1312_v20 = vpop.f32.mrb[14].mxu0 }
 0x29d   :  { %v1313_v2 = vadd.f32 %v1312_v20, %v1239_v15  ;;  %v3221_v34 = vpop.f32.mrb[15].mxu0 }
 0x29f   :  { %v1387_v63 = vadd.f32 %v1386_v13, %v1313_v2 }
 0x2a0   :  { %v1460_v0 = vpop.f32.mrb[16].mxu0 }
 0x2a1   :  { %v1461_v36 = vadd.f32 %v1460_v0, %v1387_v63  ;;  %v3231_v35 = vpop.f32.mrb[17].mxu0 }
 0x2a2   :  { %v2259_v35 = vand.u32 4294901760, %v2221_v39 }
 0x2a3   :  { %v1533_v21 = vadd.f32 %v1532_v54, %v1461_v36  ;;  %v2214_v54 = vld [vmem:[#allocation17] sm:$0xff]  ;;  %v2256_v36 = vand.u32 4294901760, %v2220_v8 }
 0x2a5   :  { %v1543_v29 = vadd.f32 %v2904_v44, %v1533_v21  ;;  %v4734_v44 = vsub.f32 %v2220_v8, %v2256_v36  ;;  %v4736_v21 = vsub.f32 %v2221_v39, %v2259_v35 }
 0x2a7   :  { %vm1544_vm5 = vcmp.gt.f32.partialorder %v1543_v29, 0.0  ;;  %v1545_v62 = vmul.f32 0.01, %v1543_v29 }
 0x2a9   :  { %v1546_v61 = vsel %vm1544_vm5, %v1543_v29, %v1545_v62  ;;  %v4750_v29 = vpack.c.bf16 %v2259_v35, %v2256_v36  ;;  %v5122_v62 = vand.u32 4294901760, %v4521_v10  ;;  %v5126_v10 = vand.u32 4294901760, %v4537_v24 }
 0x2aa   :  { %v4678_v9 = vand.u32 4294901760, %v1546_v61  ;;  %v5132_v24 = vand.u32 4294901760, %v4564_v48 }
 0x2ac   :  { %v4681_v55 = vsub.f32 %v1546_v61, %v4678_v9  ;;  %v5123_v61 = vand.u32 4294901760, %v4523_v11  ;;  %v5127_v11 = vand.u32 4294901760, %v4539_v25  ;;  %v5133_v25 = vand.u32 4294901760, %v4566_v49 }
 0x2ae   :  { %v1653_v22 = vand.u32 4294901760, %v4681_v55 }
 0x2b0   :  { %v1654_v13 = vsub.f32 %v4681_v55, %v1653_v22 }
 0x2b2   :  { %v1655_v23 = vand.u32 4294901760, %v1654_v13  ;;  %v3754_v13 = vpack.c.bf16 %v5123_v61, %v5122_v62 }
 0x2b4   :  { %3270 = vmatmul.mubr.f32.vlgmr.msra.gmra.mrb[18].mxu0 %v1655_v23  ;;  %v5124_v23 = vand.u32 4294901760, %v4529_v17  ;;  %v5129_v17 = vand.u32 4294901760, %v4547_v32  ;;  %v5135_v32 = vand.u32 4294901760, %v4571_v51 }
 0x2b5   :  { %3683 = vmatpush3.bf16.msra.mxu0 %v4598_v6  ;;  %3304 = vmatprep.mubr.msk.f32.mxu0 %vm4253_vm0, %v4252_v1  ;;  %v2215_v6 = vld [vmem:[#allocation17 + $0x8] sm:$0xff] }
 0x2b6   :  { %3684 = vmatprep.subr.bf16.mxu0 %v4255_v4 }
 0x2b9   :  { %3686 = vmatpush3.bf16.msra.mxu0 %v4602_v14  ;;  %v2216_v14 = vld [vmem:[#allocation17 + $0x10] sm:$0xff] }
 0x2ba   :  { %3687 = vmatprep.subr.bf16.mxu0 %v4255_v4 }
 0x2bd   :  { %3689 = vmatpush3.bf16.msra.mxu0 %v4612_v27  ;;  %v2238_v27 = vand.u32 4294901760, %v2214_v54 }
 0x2be   :  { %3690 = vmatprep.subr.bf16.mxu0 %v4255_v4 }
 0x2bf   :  { %v4714_v30 = vsub.f32 %v2214_v54, %v2238_v27  ;;  %v5125_v54 = vand.u32 4294901760, %v4531_v18 }
 0x2c1   :  { %3692 = vmatpush3.bf16.msra.mxu0 %v4622_v37  ;;  %v2241_v37 = vand.u32 4294901760, %v2215_v6 }
 0x2c2   :  { %3693 = vmatprep.subr.bf16.mxu0 %v4255_v4 }
 0x2c3   :  { %v4712_v16 = vpack.c.bf16 %v2241_v37, %v2238_v27  ;;  %v5131_v27 = vand.u32 4294901760, %v4562_v47  ;;  %v5137_v47 = vand.u32 4294901760, %v4580_v58 }
 0x2c5   :  { %3695 = vmatpush3.bf16.msra.mxu0 %v4632_v52  ;;  %v2244_v52 = vand.u32 4294901760, %v2216_v14  ;;  %3803 = vmatpush3.bf16.msra.mxu1 %v4712_v16 }
 0x2c6   :  { %3696 = vmatprep.subr.bf16.mxu0 %v4255_v4  ;;  %3804 = vmatprep.subr.bf16.mxu1 %v4255_v4 }
 0x2c7   :  { %v4718_v15 = vsub.f32 %v2216_v14, %v2244_v52  ;;  %v3760_v14 = vpack.c.bf16 %v5127_v11, %v5126_v10 }
 0x2c9   :  { %3698 = vmatpush3.bf16.msra.mxu0 %v4642_v3  ;;  %v2218_v3 = vld [vmem:[#allocation17 + $0x20] sm:$0xff]  ;;  %v2345_v10 = vand.u32 4294901760, %v4718_v15 }
 0x2ca   :  { %3699 = vmatprep.subr.bf16.mxu0 %v4255_v4  ;;  %v2250_v63 = vand.u32 4294901760, %v2218_v3 }
 0x2cc   :  { %v4722_v2 = vsub.f32 %v2218_v3, %v2250_v63 }
 0x2cd   :  { %3701 = vmatpush3.bf16.msra.mxu0 %v4652_v28  ;;  %v2219_v28 = vld [vmem:[#allocation17 + $0x28] sm:$0xff] }
 0x2ce   :  { %3702 = vmatprep.subr.bf16.mxu0 %v4255_v4  ;;  %v2253_v7 = vand.u32 4294901760, %v2219_v28 }
 0x2d0   :  { %v4730_v0 = vsub.f32 %v2219_v28, %v2253_v7  ;;  %v2228_v28 = vld [vmem:[#allocation17 + $0x70] sm:$0xff] }
 0x2d1   :  { %3704 = vmatpush3.bf16.msra.mxu0 %v4660_v40  ;;  %v2247_v40 = vand.u32 4294901760, %v2217_v45 }
 0x2d2   :  { %3705 = vmatprep.subr.bf16.mxu0 %v4255_v4 }
 0x2d3   :  { %v4720_v20 = vsub.f32 %v2217_v45, %v2247_v40  ;;  %v4728_v34 = vpack.c.bf16 %v2247_v40, %v2244_v52  ;;  %v3769_v45 = vpack.c.bf16 %v5133_v25, %v5132_v24  ;;  %v2229_v40 = vld [vmem:[#allocation17 + $0x78] sm:$0xff]  ;;  %v2359_v24 = vand.u32 4294901760, %v4722_v2 }
 0x2d4   :  { %3305 = vmatmul.mubr.f32.vlgmr.msra.gmra.mrb[18].mxu0 %v4678_v9  ;;  %v2366_v25 = vand.u32 4294901760, %v4730_v0 }
 0x2d5   :  { %3707 = vmatpush3.bf16.msra.mxu0 %v3706_v41  ;;  %3339 = vmatprep.mubr.msk.f32.mxu0 %vm4253_vm0, %v4252_v1  ;;  %v4716_v41 = vsub.f32 %v2215_v6, %v2241_v37  ;;  %v3757_v6 = vpack.c.bf16 %v5125_v54, %v5124_v23  ;;  %v2352_v11 = vand.u32 4294901760, %v4720_v20 }
 0x2d6   :  { %3708 = vmatprep.subr.bf16.mxu0 %v4255_v4  ;;  %3806 = vmatpush3.bf16.msra.mxu1 %v4728_v34 }
 0x2d7   :  { %3807 = vmatprep.subr.bf16.mxu1 %v4255_v4  ;;  %v2338_v62 = vand.u32 4294901760, %v4716_v41 }
 0x2d9   :  { %3710 = vmatpush3.bf16.msra.mxu0 %v3709_v42  ;;  %v4742_v42 = vpack.c.bf16 %v2253_v7, %v2250_v63 }
 0x2da   :  { %3711 = vmatprep.subr.bf16.mxu0 %v4255_v4 }
 0x2db   :  { %3809 = vmatpush3.bf16.msra.mxu1 %v4742_v42 }
 0x2dc   :  { %3810 = vmatprep.subr.bf16.mxu1 %v4255_v4 }
 0x2dd   :  { %3713 = vmatpush3.bf16.msra.mxu0 %v3712_v53  ;;  %v5119_v53 = vpack.c.bf16 %v4566_v49, %v4564_v48  ;;  %v2225_v49 = vld [vmem:[#allocation17 + $0x58] sm:$0xff] }
 0x2de   :  { %3714 = vmatprep.subr.bf16.mxu0 %v4255_v4 }
 0x2df   :  { %3812 = vmatpush3.bf16.msra.mxu1 %v4750_v29 }
 0x2e0   :  { %3813 = vmatprep.subr.bf16.mxu1 %v4255_v4 }
 0x2e1   :  { %3716 = vmatpush3.bf16.msra.mxu0 %v3715_v59  ;;  %v5120_v59 = vpack.c.bf16 %v4571_v51, %v4569_v50  ;;  %v2226_v51 = vld [vmem:[#allocation17 + $0x60] sm:$0xff] }
 0x2e2   :  { %3717 = vmatprep.subr.bf16.mxu0 %v4255_v4 }
 0x2e5   :  { %3719 = vmatpush3.bf16.msra.mxu0 %v3718_v60  ;;  %v5121_v60 = vpack.c.bf16 %v4580_v58, %v4578_v57 }
 0x2e6   :  { %3720 = vmatprep.subr.bf16.mxu0 %v4255_v4 }
 0x2e9   :  { %3722 = vmatpush3.bf16.msra.mxu0 %v5119_v53  ;;  %v2280_v53 = vand.u32 4294901760, %v2228_v28 }
 0x2ea   :  { %3723 = vmatprep.subr.bf16.mxu0 %v4255_v4 }
 0x2ed   :  { %3725 = vmatpush3.bf16.msra.mxu0 %v5120_v59  ;;  %v2283_v59 = vand.u32 4294901760, %v2229_v40 }
 0x2ee   :  { %3726 = vmatprep.subr.bf16.mxu0 %v4255_v4 }
 0x2ef   :  { %v4880_v61 = vpack.c.bf16 %v2283_v59, %v2280_v53  ;;  %v4884_v23 = vsub.f32 %v2229_v40, %v2283_v59 }
 0x2f1   :  { %3728 = vmatpush3.bf16.msra.mxu0 %v5121_v60  ;;  %v2331_v60 = vand.u32 4294901760, %v4714_v30 }
 0x2f2   :  { %3729 = vmatprep.subr.bf16.mxu0 %v4255_v4 }
 0x2f3   :  { %v2332_v54 = vsub.f32 %v4714_v30, %v2331_v60 }
 0x2f4   :  { %3340 = vmatmul.mubr.f32.vlgmr.msra.gmra.mrb[18].mxu0 %v4681_v55  ;;  %v5128_v55 = vand.u32 4294901760, %v4545_v31  ;;  %v5134_v31 = vand.u32 4294901760, %v4569_v50  ;;  %v2271_v50 = vand.u32 4294901760, %v2225_v49 }
 0x2f5   :  { %3731 = vmatpush3.bf16.msra.mxu0 %v4517_v5  ;;  %3374 = vmatprep.mubr.msk.f32.mxu0 %vm4253_vm0, %v4252_v1 }
 0x2f6   :  { %3732 = vmatprep.subr.bf16.mxu0 %v4255_v4  ;;  %v3763_v18 = vpack.c.bf16 %v5129_v17, %v5128_v55  ;;  %v3772_v52 = vpack.c.bf16 %v5135_v32, %v5134_v31  ;;  %v4870_v39 = vsub.f32 %v2225_v49, %v2271_v50  ;;  %v2346_v17 = vsub.f32 %v4718_v15, %v2345_v10 }
 0x2f7   :  { %v2360_v31 = vsub.f32 %v4722_v2, %v2359_v24  ;;  %v2367_v32 = vsub.f32 %v4730_v0, %v2366_v25 }
 0x2f8   :  { %v5118_v40 = vand.u32 4294901760, %v4870_v39 }
 0x2f9   :  { %3734 = vmatpush3.bf16.msra.mxu0 %v4526_v12 }
 0x2fa   :  { %3735 = vmatprep.subr.bf16.mxu0 %v4255_v4 }
 0x2fd   :  { %3737 = vmatpush3.bf16.msra.mxu0 %v4534_v19 }
 0x2fe   :  { %3738 = vmatprep.subr.bf16.mxu0 %v4255_v4 }
 0x301   :  { %3740 = vmatpush3.bf16.msra.mxu0 %v4542_v26 }
 0x302   :  { %3741 = vmatprep.subr.bf16.mxu0 %v4255_v4 }
 0x305   :  { %3743 = vmatpush3.bf16.msra.mxu0 %v4550_v33 }
 0x306   :  { %3744 = vmatprep.subr.bf16.mxu0 %v4255_v4 }
 0x309   :  { %3746 = vmatpush3.bf16.msra.mxu0 %v4554_v38 }
 0x30a   :  { %3747 = vmatprep.subr.bf16.mxu0 %v4255_v4 }
 0x30d   :  { %3749 = vmatpush3.bf16.msra.mxu0 %v4558_v43 }
 0x30e   :  { %3750 = vmatprep.subr.bf16.mxu0 %v4255_v4 }
 0x311   :  { %3752 = vmatpush3.bf16.msra.mxu0 %v4576_v56 }
 0x312   :  { %3753 = vmatprep.subr.bf16.mxu0 %v4255_v4 }
 0x314   :  { %3375 = vmatmul.mubr.f32.vlgmr.msra.gmra.mrb[18].mxu0 %v1653_v22  ;;  %v5130_v22 = vand.u32 4294901760, %v4560_v46  ;;  %v5136_v46 = vand.u32 4294901760, %v4578_v57  ;;  %v2274_v57 = vand.u32 4294901760, %v2226_v51 }
 0x315   :  { %3755 = vmatpush3.bf16.msra.mxu0 %v3754_v13  ;;  %3409 = vmatprep.mubr.msk.f32.mxu0 %vm4253_vm0, %v4252_v1  ;;  %v4882_v13 = vsub.f32 %v2228_v28, %v2280_v53 }
 0x316   :  { %3756 = vmatprep.subr.bf16.mxu0 %v4255_v4  ;;  %v3766_v37 = vpack.c.bf16 %v5131_v27, %v5130_v22  ;;  %v3775_v3 = vpack.c.bf16 %v5137_v47, %v5136_v46  ;;  %v4873_v36 = vsub.f32 %v2226_v51, %v2274_v57  ;;  %v2347_v27 = vand.u32 4294901760, %v2346_v17 }
 0x317   :  { %v2368_v46 = vand.u32 4294901760, %v2367_v32  ;;  %v2373_v47 = vand.u32 4294901760, %v4734_v44 }
 0x319   :  { %3758 = vmatpush3.bf16.msra.mxu0 %v3757_v6  ;;  %v2339_v6 = vsub.f32 %v4716_v41, %v2338_v62 }
 0x31a   :  { %3759 = vmatprep.subr.bf16.mxu0 %v4255_v4 }
 0x31b   :  { %v2340_v55 = vand.u32 4294901760, %v2339_v6 }
 0x31d   :  { %3761 = vmatpush3.bf16.msra.mxu0 %v3760_v14  ;;  %v2333_v14 = vand.u32 4294901760, %v2332_v54  ;;  %v2409_v54 = vsub.f32 %v4870_v39, %v5118_v40 }
 0x31e   :  { %3762 = vmatprep.subr.bf16.mxu0 %v4255_v4 }
 0x31f   :  { %v4902_v22 = vpack.c.bf16 %v2340_v55, %v2333_v14  ;;  %v2410_v14 = vand.u32 4294901760, %v2409_v54  ;;  %v5117_v55 = vand.u32 4294901760, %v4873_v36  ;;  %v3859_v54 = vpack.c.bf16 %v4736_v21, %v4734_v44 }
 0x321   :  { %3764 = vmatpush3.bf16.msra.mxu0 %v3763_v18  ;;  %v2353_v18 = vsub.f32 %v4720_v20, %v2352_v11 }
 0x322   :  { %3765 = vmatprep.subr.bf16.mxu0 %v4255_v4 }
 0x325   :  { %3767 = vmatpush3.bf16.msra.mxu0 %v3766_v37  ;;  %v2354_v37 = vand.u32 4294901760, %v2353_v18 }
 0x326   :  { %3768 = vmatprep.subr.bf16.mxu0 %v4255_v4 }
 0x329   :  { %3770 = vmatpush3.bf16.msra.mxu0 %v3769_v45  ;;  %v4906_v45 = vpack.c.bf16 %v2354_v37, %v2347_v27  ;;  %v2416_v27 = vsub.f32 %v4873_v36, %v5117_v55 }
 0x32a   :  { %3771 = vmatprep.subr.bf16.mxu0 %v4255_v4 }
 0x32d   :  { %3773 = vmatpush3.bf16.msra.mxu0 %v3772_v52  ;;  %v2361_v52 = vand.u32 4294901760, %v2360_v31  ;;  %v2417_v31 = vand.u32 4294901760, %v2416_v27 }
 0x32e   :  { %3774 = vmatprep.subr.bf16.mxu0 %v4255_v4 }
 0x331   :  { %3776 = vmatpush3.bf16.msra.mxu0 %v3775_v3  ;;  %v2380_v3 = vand.u32 4294901760, %v4736_v21 }
 0x332   :  { %3777 = vmatprep.subr.bf16.mxu0 %v4255_v4 }
 0x334   :  { %3410 = vmatmul.mubr.f32.vlgmr.msra.gmra.mrb[18].mxu0 %v4678_v9 }
 0x335   :  { %3779 = vmatpush3.bf16.msra.mxu0 %v4517_v5  ;;  %3444 = vmatprep.mubr.msk.f32.mxu0 %vm4253_vm0, %v4252_v1  ;;  %v2222_v5 = vld [vmem:[#allocation17 + $0x40] sm:$0xff] }
 0x336   :  { %3780 = vmatprep.subr.bf16.mxu0 %v4255_v4 }
 0x339   :  { %3782 = vmatpush3.bf16.msra.mxu0 %v4526_v12  ;;  %v2223_v12 = vld [vmem:[#allocation17 + $0x48] sm:$0xff] }
 0x33a   :  { %3783 = vmatprep.subr.bf16.mxu0 %v4255_v4 }
 0x33d   :  { %3785 = vmatpush3.bf16.msra.mxu0 %v4534_v19  ;;  %v2262_v19 = vand.u32 4294901760, %v2222_v5 }
 0x33e   :  { %3786 = vmatprep.subr.bf16.mxu0 %v4255_v4 }
 0x33f   :  { %v4864_v63 = vsub.f32 %v2222_v5, %v2262_v19  ;;  %v3832_v5 = vpack.c.bf16 %v2368_v46, %v2361_v52  ;;  %v5115_v52 = vand.u32 4294901760, %v4882_v13  ;;  %v5114_v46 = vand.u32 4294901760, %v4884_v23 }
 0x341   :  { %3788 = vmatpush3.bf16.msra.mxu0 %v4542_v26  ;;  %v2265_v26 = vand.u32 4294901760, %v2223_v12  ;;  %v2387_v49 = vand.u32 4294901760, %v4864_v63 }
 0x342   :  { %3789 = vmatprep.subr.bf16.mxu0 %v4255_v4 }
 0x343   :  { %v4854_v48 = vpack.c.bf16 %v2265_v26, %v2262_v19  ;;  %v4866_v7 = vsub.f32 %v2223_v12, %v2265_v26  ;;  %v2374_v12 = vsub.f32 %v4734_v44, %v2373_v47  ;;  %v2381_v19 = vsub.f32 %v4736_v21, %v2380_v3 }
 0x344   :  { %v2388_v51 = vsub.f32 %v4864_v63, %v2387_v49 }
 0x345   :  { %3791 = vmatpush3.bf16.msra.mxu0 %v4550_v33  ;;  %v2224_v33 = vld [vmem:[#allocation17 + $0x50] sm:$0xff]  ;;  %3815 = vmatpush3.bf16.msra.mxu1 %v4854_v48  ;;  %v2375_v26 = vand.u32 4294901760, %v2374_v12 }
 0x346   :  { %3792 = vmatprep.subr.bf16.mxu0 %v4255_v4  ;;  %3816 = vmatprep.subr.bf16.mxu1 %v4255_v4 }
 0x349   :  { %3794 = vmatpush3.bf16.msra.mxu0 %v4554_v38  ;;  %v2268_v38 = vand.u32 4294901760, %v2224_v33 }
 0x34a   :  { %3795 = vmatprep.subr.bf16.mxu0 %v4255_v4 }
 0x34b   :  { %v4868_v8 = vsub.f32 %v2224_v33, %v2268_v38  ;;  %v2382_v33 = vand.u32 4294901760, %v2381_v19  ;;  %v2430_v19 = vsub.f32 %v4882_v13, %v5115_v52 }
 0x34d   :  { %3797 = vmatpush3.bf16.msra.mxu0 %v4558_v43  ;;  %v4858_v43 = vpack.c.bf16 %v2271_v50, %v2268_v38  ;;  %v2394_v38 = vand.u32 4294901760, %v4866_v7  ;;  %v3835_v50 = vpack.c.bf16 %v2382_v33, %v2375_v26  ;;  %v2401_v28 = vand.u32 4294901760, %v4868_v8 }
 0x34e   :  { %3798 = vmatprep.subr.bf16.mxu0 %v4255_v4  ;;  %v2437_v26 = vsub.f32 %v4884_v23, %v5114_v46  ;;  %v2431_v33 = vand.u32 4294901760, %v2430_v19 }
 0x34f   :  { %3818 = vmatpush3.bf16.msra.mxu1 %v4858_v43  ;;  %v2402_v59 = vsub.f32 %v4868_v8, %v2401_v28 }
 0x350   :  { %3819 = vmatprep.subr.bf16.mxu1 %v4255_v4 }
 0x351   :  { %3800 = vmatpush3.bf16.msra.mxu0 %v4576_v56  ;;  %v2227_v56 = vld [vmem:[#allocation17 + $0x68] sm:$0xff]  ;;  %v2403_v6 = vand.u32 4294901760, %v2402_v59  ;;  %v3856_v59 = vpack.c.bf16 %v4730_v0, %v4722_v2  ;;  %v5139_v0 = vand.u32 4294901760, %v4873_v36 }
 0x352   :  { %v2277_v58 = vand.u32 4294901760, %v2227_v56 }
 0x353   :  { %v3841_v18 = vpack.c.bf16 %v2410_v14, %v2403_v6  ;;  %v3862_v6 = vpack.c.bf16 %v4866_v7, %v4864_v63  ;;  %v3865_v14 = vpack.c.bf16 %v4870_v39, %v4868_v8  ;;  %v5141_v63 = vand.u32 4294901760, %v4882_v13 }
 0x354   :  { %3445 = vmatmul.mubr.f32.vlgmr.msra.gmra.mrb[18].mxu0 %v4678_v9  ;;  %v4862_v9 = vpack.c.bf16 %v2277_v58, %v2274_v57  ;;  %v4875_v35 = vsub.f32 %v2227_v56, %v2277_v58  ;;  %v2395_v56 = vsub.f32 %v4866_v7, %v2394_v38  ;;  %v2389_v57 = vand.u32 4294901760, %v2388_v51 }
 0x355   :  { %v2438_v51 = vand.u32 4294901760, %v2437_v26  ;;  %v5142_v7 = vand.u32 4294901760, %v4884_v23 }
 0x356   :  { %3821 = vmatpush3.bf16.msra.mxu1 %v4862_v9  ;;  %v2396_v58 = vand.u32 4294901760, %v2395_v56  ;;  %v5116_v17 = vand.u32 4294901760, %v4875_v35  ;;  %v3868_v27 = vpack.c.bf16 %v4875_v35, %v4873_v36  ;;  %v5140_v44 = vand.u32 4294901760, %v4875_v35 }
 0x357   :  { %3822 = vmatprep.subr.bf16.mxu1 %v4255_v4  ;;  %v3847_v56 = vpack.c.bf16 %v2438_v51, %v2431_v33 }
 0x358   :  { %v3838_v53 = vpack.c.bf16 %v2396_v58, %v2389_v57  ;;  %v2423_v37 = vsub.f32 %v4875_v35, %v5116_v17  ;;  %v3850_v57 = vpack.c.bf16 %v4716_v41, %v4714_v30  ;;  %v3853_v58 = vpack.c.bf16 %v4720_v20, %v4718_v15 }
 0x359   :  { %v3904_v30 = vpack.c.bf16 %v2366_v25, %v2359_v24  ;;  %v3907_v41 = vpack.c.bf16 %v2380_v3, %v2373_v47  ;;  %v3910_v15 = vpack.c.bf16 %v2394_v38, %v2387_v49  ;;  %v5138_v20 = vand.u32 4294901760, %v4870_v39 }
 0x35a   :  { %3824 = vmatpush3.bf16.msra.mxu1 %v4880_v61  ;;  %v2424_v32 = vand.u32 4294901760, %v2423_v37  ;;  %v3871_v37 = vpack.c.bf16 %v4884_v23, %v4882_v13  ;;  %v3916_v21 = vpack.c.bf16 %v5140_v44, %v5139_v0 }
 0x35b   :  { %3825 = vmatprep.subr.bf16.mxu1 %v4255_v4  ;;  %v3913_v2 = vpack.c.bf16 %v5138_v20, %v2401_v28 }
 0x35c   :  { %v3844_v12 = vpack.c.bf16 %v2424_v32, %v2417_v31  ;;  %v2905_v31 = vld [vmem:[#allocation15] ss:$0 sm:$0xff] }
 0x427   :  { %v2207_v32 = vpop.f32.mrb[18].mxu0 }
 0x428   :  { %v3945_v19 = vadd.f32 %v2905_v31, %v2207_v32  ;;  %v3446_v26 = vpop.f32.mrb[19].mxu0 }
 0x42a   :  { %vm2211_vm6 = vcmp.gt.f32.partialorder %v3945_v19, 0.0  ;;  %v2212_v33 = vmul.f32 0.01, %v3945_v19 }
 0x42c   :  { %v2213_v51 = vsel %vm2211_vm6, %v3945_v19, %v2212_v33 }
 0x42d   :  { %v4970_v46 = vand.u32 4294901760, %v2213_v51 }
 0x42f   :  { %v2319_v52 = vsub.f32 %v2213_v51, %v4970_v46 }
 0x431   :  { %v2320_v17 = vand.u32 4294901760, %v2319_v52 }
 0x433   :  { %v2321_v55 = vsub.f32 %v2319_v52, %v2320_v17 }
 0x435   :  { %v2322_v40 = vand.u32 4294901760, %v2321_v55 }
 0x437   :  { %3480 = vmatmul.mubr.f32.vlgmr.msra.gmra.mrb[18].mxu1 %v2322_v40 }
 0x438   :  { %3827 = vmatpush3.bf16.msra.mxu1 %v4902_v22  ;;  %3514 = vmatprep.mubr.msk.f32.mxu1 %vm4253_vm0, %v4252_v1  ;;  %v3898_v22 = vpack.c.bf16 %v2338_v62, %v2331_v60  ;;  %v3919_v60 = vpack.c.bf16 %v5142_v7, %v5141_v63 }
 0x439   :  { %3828 = vmatprep.subr.bf16.mxu1 %v4255_v4 }
 0x43c   :  { %3830 = vmatpush3.bf16.msra.mxu1 %v4906_v45  ;;  %v3901_v45 = vpack.c.bf16 %v2352_v11, %v2345_v10 }
 0x43d   :  { %3831 = vmatprep.subr.bf16.mxu1 %v4255_v4 }
 0x440   :  { %3833 = vmatpush3.bf16.msra.mxu1 %v3832_v5 }
 0x441   :  { %3834 = vmatprep.subr.bf16.mxu1 %v4255_v4 }
 0x444   :  { %3836 = vmatpush3.bf16.msra.mxu1 %v3835_v50 }
 0x445   :  { %3837 = vmatprep.subr.bf16.mxu1 %v4255_v4 }
 0x448   :  { %3839 = vmatpush3.bf16.msra.mxu1 %v3838_v53 }
 0x449   :  { %3840 = vmatprep.subr.bf16.mxu1 %v4255_v4 }
 0x44c   :  { %3842 = vmatpush3.bf16.msra.mxu1 %v3841_v18 }
 0x44d   :  { %3843 = vmatprep.subr.bf16.mxu1 %v4255_v4 }
 0x450   :  { %3845 = vmatpush3.bf16.msra.mxu1 %v3844_v12 }
 0x451   :  { %3846 = vmatprep.subr.bf16.mxu1 %v4255_v4 }
 0x454   :  { %3848 = vmatpush3.bf16.msra.mxu1 %v3847_v56 }
 0x455   :  { %3849 = vmatprep.subr.bf16.mxu1 %v4255_v4 }
 0x457   :  { %3515 = vmatmul.mubr.f32.vlgmr.msra.gmra.mrb[18].mxu1 %v4970_v46 }
 0x458   :  { %3851 = vmatpush3.bf16.msra.mxu1 %v3850_v57  ;;  %3549 = vmatprep.mubr.msk.f32.mxu1 %vm4253_vm0, %v4252_v1 }
 0x459   :  { %3852 = vmatprep.subr.bf16.mxu1 %v4255_v4 }
 0x45c   :  { %3854 = vmatpush3.bf16.msra.mxu1 %v3853_v58 }
 0x45d   :  { %3855 = vmatprep.subr.bf16.mxu1 %v4255_v4 }
 0x460   :  { %3857 = vmatpush3.bf16.msra.mxu1 %v3856_v59 }
 0x461   :  { %3858 = vmatprep.subr.bf16.mxu1 %v4255_v4 }
 0x464   :  { %3860 = vmatpush3.bf16.msra.mxu1 %v3859_v54 }
 0x465   :  { %3861 = vmatprep.subr.bf16.mxu1 %v4255_v4 }
 0x468   :  { %3863 = vmatpush3.bf16.msra.mxu1 %v3862_v6 }
 0x469   :  { %3864 = vmatprep.subr.bf16.mxu1 %v4255_v4 }
 0x46c   :  { %3866 = vmatpush3.bf16.msra.mxu1 %v3865_v14 }
 0x46d   :  { %3867 = vmatprep.subr.bf16.mxu1 %v4255_v4 }
 0x470   :  { %3869 = vmatpush3.bf16.msra.mxu1 %v3868_v27 }
 0x471   :  { %3870 = vmatprep.subr.bf16.mxu1 %v4255_v4 }
 0x474   :  { %3872 = vmatpush3.bf16.msra.mxu1 %v3871_v37 }
 0x475   :  { %3873 = vmatprep.subr.bf16.mxu1 %v4255_v4 }
 0x477   :  { %3550 = vmatmul.mubr.f32.vlgmr.msra.gmra.mrb[18].mxu1 %v2319_v52 }
 0x478   :  { %3875 = vmatpush3.bf16.msra.mxu1 %v4712_v16  ;;  %3584 = vmatprep.mubr.msk.f32.mxu1 %vm4253_vm0, %v4252_v1 }
 0x479   :  { %3876 = vmatprep.subr.bf16.mxu1 %v4255_v4 }
 0x47c   :  { %3878 = vmatpush3.bf16.msra.mxu1 %v4728_v34 }
 0x47d   :  { %3879 = vmatprep.subr.bf16.mxu1 %v4255_v4 }
 0x480   :  { %3881 = vmatpush3.bf16.msra.mxu1 %v4742_v42 }
 0x481   :  { %3882 = vmatprep.subr.bf16.mxu1 %v4255_v4 }
 0x484   :  { %3884 = vmatpush3.bf16.msra.mxu1 %v4750_v29 }
 0x485   :  { %3885 = vmatprep.subr.bf16.mxu1 %v4255_v4 }
 0x488   :  { %3887 = vmatpush3.bf16.msra.mxu1 %v4854_v48 }
 0x489   :  { %3888 = vmatprep.subr.bf16.mxu1 %v4255_v4 }
 0x48c   :  { %3890 = vmatpush3.bf16.msra.mxu1 %v4858_v43 }
 0x48d   :  { %3891 = vmatprep.subr.bf16.mxu1 %v4255_v4 }
 0x490   :  { %3893 = vmatpush3.bf16.msra.mxu1 %v4862_v9 }
 0x491   :  { %3894 = vmatprep.subr.bf16.mxu1 %v4255_v4 }
 0x494   :  { %3896 = vmatpush3.bf16.msra.mxu1 %v4880_v61 }
 0x495   :  { %3897 = vmatprep.subr.bf16.mxu1 %v4255_v4 }
 0x497   :  { %3585 = vmatmul.mubr.f32.vlgmr.msra.gmra.mrb[18].mxu1 %v2320_v17 }
 0x498   :  { %3899 = vmatpush3.bf16.msra.mxu1 %v3898_v22  ;;  %3619 = vmatprep.mubr.msk.f32.mxu1 %vm4253_vm0, %v4252_v1 }
 0x499   :  { %3900 = vmatprep.subr.bf16.mxu1 %v4255_v4 }
 0x49c   :  { %3902 = vmatpush3.bf16.msra.mxu1 %v3901_v45 }
 0x49d   :  { %3903 = vmatprep.subr.bf16.mxu1 %v4255_v4 }
 0x4a0   :  { %3905 = vmatpush3.bf16.msra.mxu1 %v3904_v30 }
 0x4a1   :  { %3906 = vmatprep.subr.bf16.mxu1 %v4255_v4 }
 0x4a4   :  { %3908 = vmatpush3.bf16.msra.mxu1 %v3907_v41 }
 0x4a5   :  { %3909 = vmatprep.subr.bf16.mxu1 %v4255_v4 }
 0x4a8   :  { %3911 = vmatpush3.bf16.msra.mxu1 %v3910_v15 }
 0x4a9   :  { %3912 = vmatprep.subr.bf16.mxu1 %v4255_v4 }
 0x4ac   :  { %3914 = vmatpush3.bf16.msra.mxu1 %v3913_v2 }
 0x4ad   :  { %3915 = vmatprep.subr.bf16.mxu1 %v4255_v4 }
 0x4b0   :  { %3917 = vmatpush3.bf16.msra.mxu1 %v3916_v21 }
 0x4b1   :  { %3918 = vmatprep.subr.bf16.mxu1 %v4255_v4 }
 0x4b4   :  { %3920 = vmatpush3.bf16.msra.mxu1 %v3919_v60 }
 0x4b5   :  { %3921 = vmatprep.subr.bf16.mxu1 %v4255_v4 }
 0x4b7   :  { %3620 = vmatmul.mubr.f32.vlgmr.msra.gmra.mrb[18].mxu1 %v4970_v46 }
 0x4b8   :  { %3923 = vmatpush3.bf16.msra.mxu1 %v4712_v16  ;;  %3654 = vmatprep.mubr.msk.f32.mxu1 %vm4253_vm0, %v4252_v1  ;;  %v2906_v1 = vld [vmem:[#allocation18] ss:$0 sm:$0xff] }
 0x4b9   :  { %3924 = vmatprep.subr.bf16.mxu1 %v4255_v4 }
 0x4bc   :  { %3926 = vmatpush3.bf16.msra.mxu1 %v4728_v34 }
 0x4bd   :  { %3927 = vmatprep.subr.bf16.mxu1 %v4255_v4 }
 0x4c0   :  { %3929 = vmatpush3.bf16.msra.mxu1 %v4742_v42 }
 0x4c1   :  { %3930 = vmatprep.subr.bf16.mxu1 %v4255_v4 }
 0x4c4   :  { %3932 = vmatpush3.bf16.msra.mxu1 %v4750_v29 }
 0x4c5   :  { %3933 = vmatprep.subr.bf16.mxu1 %v4255_v4 }
 0x4c8   :  { %3935 = vmatpush3.bf16.msra.mxu1 %v4854_v48 }
 0x4c9   :  { %3936 = vmatprep.subr.bf16.mxu1 %v4255_v4 }
 0x4cc   :  { %3938 = vmatpush3.bf16.msra.mxu1 %v4858_v43 }
 0x4cd   :  { %3939 = vmatprep.subr.bf16.mxu1 %v4255_v4 }
 0x4d0   :  { %3941 = vmatpush3.bf16.msra.mxu1 %v4862_v9 }
 0x4d1   :  { %3942 = vmatprep.subr.bf16.mxu1 %v4255_v4 }
 0x4d4   :  { %3944 = vmatpush3.bf16.msra.mxu1 %v4880_v61 }
 0x4d7   :  { %3655 = vmatmul.mubr.f32.vlgmr.msra.gmra.mrb[18].mxu1 %v4970_v46 }
 0x5aa   :  { %v2874_v16 = vpop.f32.mrb[18].mxu1 }
 0x5ab   :  { %v3946_v34 = vadd.f32 %v2906_v1, %v2874_v16  ;;  %v3656_v42 = vpop.f32.mrb[19].mxu1 }
 0x5ad   :  { %2878 = vst [vmem:[#allocation20] sm:$0x3] %v3946_v34 }
 0x5ae   :  { %4215 = shalt.err (!%p4212_p0)
}
 0x5af   :  { %s4216_s18 = scalar_lea.hbm %s5097_s10, 32 }
 0x5b0   :  { %p4217_p1 = scmp.ne.s32.totalorder %s5097_s10, %s4216_s18  ;;  %p4220_p2 = scmp.lt.u32.totalorder %s4216_s18, %s5097_s10 }
 0x5b2   :  { %p4222_p3 = pnand %p4220_p2, %p4217_p1 }
 0x5b4   :  { %4225 = shalt.err (!%p4222_p3)
}
 0x5b5   :  { %2888 = dma.vmem_to_hbm [thread:$0]  %s2886_s4, 32, %s5097_s10, [#allocation5]  }
 0x5b6   :  { %4238 = dma.done.wait [#allocation5], 32  }
 0x5b7   :  { %4239 = vsyncadd [#allocation5], 4294967264 }
 0x5b8   :  { %2892 = vsyncpa [#allocation4], 1 }
 0x5b9   :  { %2893 = vsyncpa [#allocation7], 1 }
 0x5ba   :  { %2894 = vsyncpa [#allocation10], 1 }
 0x5bb   :  { %2895 = vsyncpa [#allocation13], 1 }
 0x5bc   :  { %2896 = vsyncpa [#allocation16], 1 }
 0x5bd   :  { %2897 = vsyncpa [#allocation19], 1 }
 0x5be   :  { %2898 = vsyncpa [#allocation5], 1 }

</bundles_post_ra>
